<compile_context>
chip_gen: v6e
topology: v6e:2x2x1
jax: 0.10.0
libtpu: 0.0.40
codegen_flags: <defaults>
</compile_context>

<pallas_src>
import functools

import jax
import jax.numpy as jnp
from jax import lax
from jax.experimental import pallas as pl
from jax.experimental.pallas import tpu as pltpu

_MIB = 1024 * 1024
_LANE = 128


def _rup(n, m):
    return ((n + m - 1) // m) * m


def _vmem_capacity_bytes():
    """Per-core VMEM capacity; conservative (v7x, 64 MiB) fallback."""
    try:
        return int(pltpu.get_tpu_info().vmem_capacity_bytes)
    except Exception:
        return 64 * _MIB


def _largest_divisor_tile(total, target, align):
    """Largest multiple of `align` dividing `total`, at most max(target, align).

    `total` is always a multiple of 128 here, so `align` (8/16/32/128) always
    divides it and is a valid fallback.
    """
    t = (min(target, total) // align) * align
    while t > align:
        if total % t == 0:
            return t
        t -= align
    return align


# ---------------------------------------------------------------------------
# Kernel 1: fused q/k/v projection, one grid step = one (tm, D) row tile.
# The qk scale is already folded into the fused weight/bias by the wrapper.
# ---------------------------------------------------------------------------
def _qkv_proj_kernel(x_ref, w_ref, b_ref, q_ref, k_ref, v_ref):
    n_head, _, d_head = q_ref.shape
    D = n_head * d_head
    y = jnp.dot(x_ref[...], w_ref[...], preferred_element_type=jnp.float32)
    y = (y + b_ref[...]).astype(q_ref.dtype)            # (tm, 3D)
    # Static head split: write head-major blocks so the attention kernel reads
    # clean (n_head, tile, d_head) tiles with no HBM transpose in between.
    for h in range(n_head):
        lo = h * d_head
        q_ref[h] = y[:, lo:lo + d_head]
        k_ref[h] = y[:, D + lo:D + lo + d_head]
        v_ref[h] = y[:, 2 * D + lo:2 * D + lo + d_head]


# ---------------------------------------------------------------------------
# Kernel 2: flash attention (all heads per step) + fused output projection.
# grid = (B, n_q_tiles, n_kv_tiles); kv axis = online-softmax reduction.
# ---------------------------------------------------------------------------
def _flash_attn_kernel(q_ref, k_ref, v_ref, wo_ref, bo_ref, out_ref, qk_ref,
                       m_sc, l_sc, acc_sc, *, t_valid, t_pad):
    n_head = q_ref.shape[0]
    tk = k_ref.shape[1]
    ki = pl.program_id(2)

    @pl.when(ki == 0)
    def _():
        m_sc[...] = jnp.full_like(m_sc, -jnp.inf)
        l_sc[...] = jnp.zeros_like(l_sc)
        acc_sc[...] = jnp.zeros_like(acc_sc)

    q = q_ref[...]                                   # (H, tq, d_head)
    k = k_ref[...]                                   # (H, tk, d_head)
    v = v_ref[...]                                   # (H, tk, d_head)

    # Pre-softmax scores (scale folded into the projections); streamed out.
    s = jnp.einsum("hqd,hkd->hqk", q, k, preferred_element_type=jnp.float32)
    qk_ref[...] = s.astype(qk_ref.dtype)

    if t_valid != t_pad:                             # static: mask padded keys
        col = ki * tk + lax.broadcasted_iota(jnp.int32, (1, 1, tk), 2)
        s = jnp.where(col < t_valid, s, -jnp.inf)

    # Online softmax across kv tiles.
    m_prev = m_sc[...]
    m_new = jnp.maximum(m_prev, jnp.max(s, axis=-1, keepdims=True))
    alpha = jnp.exp(m_prev - m_new)
    p = jnp.exp(s - m_new)
    l_sc[...] = alpha * l_sc[...] + jnp.sum(p, axis=-1, keepdims=True)
    acc_sc[...] = alpha * acc_sc[...] + jnp.einsum(
        "hqk,hkd->hqd", p.astype(v.dtype), v, preferred_element_type=jnp.float32)
    m_sc[...] = m_new

    # Last kv tile: normalize, re-assemble the (tq, D) context with a static
    # lane concat, and run the output projection as one full-K=D matmul (full
    # MXU contraction; the context never round-trips through HBM).
    @pl.when(ki == pl.num_programs(2) - 1)
    def _():
        ctx = acc_sc[...] * pl.reciprocal(l_sc[...], approx=True)
        ctx = ctx.astype(wo_ref.dtype)               # (H, tq, d_head)
        ctx_cat = jnp.concatenate([ctx[h] for h in range(n_head)], axis=-1)
        out = jnp.dot(ctx_cat, wo_ref[...], preferred_element_type=jnp.float32)
        out_ref[...] = (out + bo_ref[...]).astype(out_ref.dtype)


def multi_head_attention(x, params, n_head, *, q_tile=None, kv_tile=None,
                         proj_tile=512, qk_dtype=jnp.float32):
    """Pallas forward for MultiHeadAttention: x (B, T, D) -> (out, qk)."""
    B, T, D = x.shape
    assert D % n_head == 0
    d_head = D // n_head
    dtype = x.dtype
    isz = jnp.dtype(dtype).itemsize
    qk_isz = jnp.dtype(qk_dtype).itemsize
    f32 = jnp.float32
    scale = d_head ** (-0.25)

    cap = _vmem_capacity_bytes()
    budget = int(0.80 * cap)
    if q_tile is None:          # bigger q tiles where 128 MiB VMEM allows
        q_tile = 512 if cap >= 100 * _MIB else 256
    if kv_tile is None:
        kv_tile = 512 if cap >= 100 * _MIB else 256

    q_align = max(8, 32 // isz)      # 8 rows (f32) / 16 (bf16) sublane alignment
    T_pad = _rup(T, _LANE)           # pad once so every tile divides the seq len

    # F.linear is y = x @ W^T + b.  Pre-transpose, fold the qk scale into the
    # q/k projections and fuse the three projections into one (D, 3D) weight.
    wq = params["wq"].astype(f32).T * scale
    bq = params["bq"].astype(f32) * scale
    wk = params["wk"].astype(f32).T * scale
    wv = params["wv"].astype(f32).T
    bv = params["bv"].astype(f32)
    w_qkv = jnp.concatenate([wq, wk, wv], axis=1).astype(dtype)           # (D, 3D)
    b_qkv = jnp.concatenate(
        [bq, jnp.zeros((D,), f32), bv]).astype(dtype).reshape(1, 3 * D)   # k: no bias
    wo = params["wo"].astype(dtype).T                                     # (D, D)
    bo = params["bo"].astype(dtype).reshape(1, D)

    x_pad = x if T_pad == T else jnp.pad(x, ((0, 0), (0, T_pad - T), (0, 0)))

    # ---- 1) fused q/k/v projection -----------------------------------------
    def proj_bytes(tm_):
        x_b = _rup(tm_, 8) * _rup(D, _LANE) * isz
        o_b = n_head * _rup(tm_, 8) * _rup(d_head, _LANE) * isz
        w_b = (_rup(D, 8) + 8) * _rup(3 * D, _LANE) * isz
        return 2 * (x_b + 3 * o_b + w_b)

    tm = _largest_divisor_tile(T_pad, proj_tile, q_align)
    while proj_bytes(tm) > budget and tm > q_align:
        tm = _largest_divisor_tile(T_pad, max(q_align, tm // 2), q_align)
    vmem_proj = int(min(max(proj_bytes(tm) * 1.3, 48 * _MIB), 0.92 * cap))

    qkv_shape = jax.ShapeDtypeStruct((B, n_head, T_pad, d_head), dtype)
    head_out_spec = pl.BlockSpec((None, n_head, tm, d_head),
                                 lambda b, i: (b, 0, i, 0))
    qh, kh, vh = pl.pallas_call(
        _qkv_proj_kernel,
        out_shape=(qkv_shape, qkv_shape, qkv_shape),
        grid_spec=pltpu.PrefetchScalarGridSpec(
            num_scalar_prefetch=0,
            grid=(B, T_pad // tm),
            in_specs=[pl.BlockSpec((None, tm, D), lambda b, i: (b, i, 0)),
                      pl.BlockSpec((D, 3 * D), lambda b, i: (0, 0)),
                      pl.BlockSpec((1, 3 * D), lambda b, i: (0, 0))],
            out_specs=[head_out_spec, head_out_spec, head_out_spec],
        ),
        compiler_params=pltpu.CompilerParams(
            dimension_semantics=("parallel", "parallel"),
            vmem_limit_bytes=vmem_proj),
    )(x_pad, w_qkv, b_qkv)

    # ---- 2) flash attention + fused output projection -----------------------
    def attn_bytes(tq_, tk_):
        dh = _rup(d_head, _LANE)
        q_b = n_head * _rup(tq_, 8) * dh * isz
        kv_b = n_head * _rup(tk_, 8) * dh * isz
        qk_b = n_head * _rup(tq_, 8) * _rup(tk_, _LANE) * qk_isz
        out_b = _rup(tq_, 8) * _rup(D, _LANE) * isz
        w_b = (_rup(D, 8) + 8) * _rup(D, _LANE) * isz
        scr = n_head * _rup(tq_, 8) * (2 * _LANE + dh) * 4
        return 2 * (q_b + 2 * kv_b + qk_b + out_b + w_b) + scr

    tq = _largest_divisor_tile(T_pad, q_tile, q_align)
    tk = _largest_divisor_tile(T_pad, kv_tile, _LANE)
    while attn_bytes(tq, tk) > budget:
        if tk > _LANE and (tk >= tq or tq <= q_align):
            tk = _largest_divisor_tile(T_pad, max(_LANE, tk // 2), _LANE)
        elif tq > q_align:
            tq = _largest_divisor_tile(T_pad, max(q_align, tq // 2), q_align)
        else:
            break
    vmem_attn = int(min(max(attn_bytes(tq, tk) * 1.3, 48 * _MIB), 0.92 * cap))

    n_q, n_kv = T_pad // tq, T_pad // tk
    # TODO(synk): when B * n_q < 2, the two v7x TensorCores cannot both be used;
    # a per-head partial-output layout would be needed to also shard over heads.
    out_pad, qk_pad = pl.pallas_call(
        functools.partial(_flash_attn_kernel, t_valid=T, t_pad=T_pad),
        out_shape=(jax.ShapeDtypeStruct((B, T_pad, D), dtype),
                   jax.ShapeDtypeStruct((B, n_head, T_pad, T_pad), qk_dtype)),
        grid_spec=pltpu.PrefetchScalarGridSpec(
            num_scalar_prefetch=0,
            grid=(B, n_q, n_kv),
            in_specs=[
                pl.BlockSpec((None, n_head, tq, d_head),
                             lambda b, qi, ki: (b, 0, qi, 0)),
                pl.BlockSpec((None, n_head, tk, d_head),
                             lambda b, qi, ki: (b, 0, ki, 0)),
                pl.BlockSpec((None, n_head, tk, d_head),
                             lambda b, qi, ki: (b, 0, ki, 0)),
                pl.BlockSpec((D, D), lambda b, qi, ki: (0, 0)),
                pl.BlockSpec((1, D), lambda b, qi, ki: (0, 0)),
            ],
            out_specs=[
                pl.BlockSpec((None, tq, D), lambda b, qi, ki: (b, qi, 0)),
                pl.BlockSpec((None, n_head, tq, tk),
                             lambda b, qi, ki: (b, 0, qi, ki)),
            ],
            scratch_shapes=[
                pltpu.VMEM((n_head, tq, 1), jnp.float32),       # running max
                pltpu.VMEM((n_head, tq, 1), jnp.float32),       # running denom
                pltpu.VMEM((n_head, tq, d_head), jnp.float32),  # running context
            ],
        ),
        compiler_params=pltpu.CompilerParams(
            dimension_semantics=("parallel", "parallel", "arbitrary"),
            vmem_limit_bytes=vmem_attn),
    )(qh, kh, vh, wo, bo)

    if T_pad == T:
        return out_pad, qk_pad
    return out_pad[:, :T, :], qk_pad[:, :, :T, :T]


# ---------------------------------------------------------------------------
# Pure-JAX reference mirroring the PyTorch forward exactly.
# ---------------------------------------------------------------------------
def _reference(x, params, n_head):
    B, T, D = x.shape
    d_head = D // n_head
    scale = d_head ** (-0.25)
    mm = functools.partial(jnp.matmul, precision=lax.Precision.HIGHEST)
    q = mm(x, params["wq"].T) + params["bq"]
    k = mm(x, params["wk"].T)
    v = mm(x, params["wv"].T) + params["bv"]
    qh = q.reshape(B, T, n_head, d_head).transpose(0, 2, 1, 3) * scale
    kh = k.reshape(B, T, n_head, d_head).transpose(0, 2, 3, 1) * scale
    vh = v.reshape(B, T, n_head, d_head).transpose(0, 2, 1, 3)
    qk = mm(qh, kh).astype(jnp.float32)
    w = jax.nn.softmax(qk, axis=-1).astype(q.dtype)
    wv_ = mm(w, vh).transpose(0, 2, 1, 3).reshape(B, T, D)
    out = mm(wv_, params["wo"].T) + params["bo"]
    return out, qk


def _make_params(key, n_state):
    ks = jax.random.split(key, 7)
    s = 0.05
    return {
        "wq": jax.random.normal(ks[0], (n_state, n_state), jnp.float32) * s,
        "bq": jax.random.normal(ks[1], (n_state,), jnp.float32) * s,
        "wk": jax.random.normal(ks[2], (n_state, n_state), jnp.float32) * s,
        "wv": jax.random.normal(ks[3], (n_state, n_state), jnp.float32) * s,
        "bv": jax.random.normal(ks[4], (n_state,), jnp.float32) * s,
        "wo": jax.random.normal(ks[5], (n_state, n_state), jnp.float32) * s,
        "bo": jax.random.normal(ks[6], (n_state,), jnp.float32) * s,
    }


def _check(x, params, n_head, **kw):
    out, qk = multi_head_attention(x, params, n_head, **kw)
    jax.block_until_ready((out, qk))
    out_ref, qk_ref = _reference(x, params, n_head)
    B, T, D = x.shape
    assert out.shape == (B, T, D) and qk.shape == (B, n_head, T, T)
    err_qk = float(jnp.max(jnp.abs(qk - qk_ref)))
    err_out = float(jnp.max(jnp.abs(out - out_ref)))
    assert err_qk < 2e-3, err_qk
    assert err_out < 5e-3, err_out


if __name__ == "__main__":
    key = jax.random.PRNGKey(0)
    k0, k1, k2, k3 = jax.random.split(key, 4)

    # Small shapes consistent with the module: batch=2, seq=8, hidden=32, 4 heads.
    B, T, n_state, n_head = 2, 8, 32, 4
    params = _make_params(k0, n_state)
    x = jax.random.normal(k1, (B, T, n_state), jnp.float32)
    _check(x, params, n_head)

    # Non-dividing sequence length with multiple q/kv tiles: exercises padding,
    # key masking and the online-softmax recurrence across kv steps.
    B2, T2, D2, H2 = 1, 200, 64, 4
    params2 = _make_params(k2, D2)
    x2 = jax.random.normal(k3, (B2, T2, D2), jnp.float32)
    _check(x2, params2, H2, q_tile=64, kv_tile=128)

    print("KERNEL_OK")
</pallas_src>

<mosaic_0001>
module attributes {stable_mosaic.version = 11 : i64} {
  func.func @_qkv_proj_kernel(%arg0: i32, %arg1: i32, %arg2: memref<1x128x32xf32, #tpu.memory_space<vmem>>, %arg3: memref<32x96xf32, #tpu.memory_space<vmem>>, %arg4: memref<1x96xf32, #tpu.memory_space<vmem>>, %arg5: memref<1x4x128x8xf32, #tpu.memory_space<vmem>>, %arg6: memref<1x4x128x8xf32, #tpu.memory_space<vmem>>, %arg7: memref<1x4x128x8xf32, #tpu.memory_space<vmem>>) attributes {dimension_semantics = [#tpu.dimension_semantics<parallel>, #tpu.dimension_semantics<parallel>], iteration_bounds = array<i64: 2, 1>, scalar_prefetch = 0 : i64, scratch_operands = 0 : i64, tpu.core_type = #tpu.core_type<tc>, window_params = [{transform_indices = @transform_0, window_bounds = array<i64: 1, 128, 32>}, {pipeline_mode = #tpu.pipeline_mode<synchronous>, transform_indices = @transform_1, window_bounds = array<i64: 32, 96>}, {pipeline_mode = #tpu.pipeline_mode<synchronous>, transform_indices = @transform_2, window_bounds = array<i64: 1, 96>}, {transform_indices = @transform_3, window_bounds = array<i64: 1, 4, 128, 8>}, {transform_indices = @transform_4, window_bounds = array<i64: 1, 4, 128, 8>}, {transform_indices = @transform_5, window_bounds = array<i64: 1, 4, 128, 8>}]} {
    %c0 = arith.constant 0 : index
    %c0_0 = arith.constant 0 : index
    %c0_1 = arith.constant 0 : index
    %0 = vector.load %arg2[%c0, %c0_0, %c0_1] : memref<1x128x32xf32, #tpu.memory_space<vmem>>, vector<1x128x32xf32>
    %1 = vector.shape_cast %0 : vector<1x128x32xf32> to vector<128x32xf32>
    %c0_2 = arith.constant 0 : index
    %c0_3 = arith.constant 0 : index
    %2 = vector.load %arg3[%c0_2, %c0_3] : memref<32x96xf32, #tpu.memory_space<vmem>>, vector<32x96xf32>
    %cst = arith.constant dense<0.000000e+00> : vector<128x96xf32>
    %3 = tpu.matmul %1, %2, %cst {dimension_numbers = #tpu.dot_dimension_numbers<[1], [0], [0], [1], [0, 0, 1, 1], [], []>} : vector<128x32xf32>, vector<32x96xf32>, vector<128x96xf32> -> vector<128x96xf32>
    %c0_4 = arith.constant 0 : index
    %c0_5 = arith.constant 0 : index
    %4 = vector.load %arg4[%c0_4, %c0_5] : memref<1x96xf32, #tpu.memory_space<vmem>>, vector<1x96xf32>
    %5 = vector.broadcast %4 : vector<1x96xf32> to vector<128x96xf32>
    %6 = arith.addf %3, %5 : vector<128x96xf32>
    %7 = vector.extract_strided_slice %6 {offsets = [0, 0], sizes = [128, 8], strides = [1, 1]} : vector<128x96xf32> to vector<128x8xf32>
    %c0_6 = arith.constant 0 : index
    %c0_7 = arith.constant 0 : index
    %c0_8 = arith.constant 0 : index
    %c0_9 = arith.constant 0 : index
    %8 = vector.load %arg5[%c0_6, %c0_7, %c0_8, %c0_9] : memref<1x4x128x8xf32, #tpu.memory_space<vmem>>, vector<1x1x128x8xf32>
    %9 = vector.shape_cast %8 : vector<1x1x128x8xf32> to vector<128x8xf32>
    %10 = vector.shape_cast %7 : vector<128x8xf32> to vector<1x1x128x8xf32>
    tpu.vector_store %arg5[%c0_6, %c0_7, %c0_8, %c0_9], %10 {strides = array<i32>} : memref<1x4x128x8xf32, #tpu.memory_space<vmem>>, vector<1x1x128x8xf32>,
    %11 = vector.extract_strided_slice %6 {offsets = [0, 32], sizes = [128, 8], strides = [1, 1]} : vector<128x96xf32> to vector<128x8xf32>
    %c0_10 = arith.constant 0 : index
    %c0_11 = arith.constant 0 : index
    %c0_12 = arith.constant 0 : index
    %c0_13 = arith.constant 0 : index
    %12 = vector.load %arg6[%c0_10, %c0_11, %c0_12, %c0_13] : memref<1x4x128x8xf32, #tpu.memory_space<vmem>>, vector<1x1x128x8xf32>
    %13 = vector.shape_cast %12 : vector<1x1x128x8xf32> to vector<128x8xf32>
    %14 = vector.shape_cast %11 : vector<128x8xf32> to vector<1x1x128x8xf32>
    tpu.vector_store %arg6[%c0_10, %c0_11, %c0_12, %c0_13], %14 {strides = array<i32>} : memref<1x4x128x8xf32, #tpu.memory_space<vmem>>, vector<1x1x128x8xf32>,
    %15 = vector.extract_strided_slice %6 {offsets = [0, 64], sizes = [128, 8], strides = [1, 1]} : vector<128x96xf32> to vector<128x8xf32>
    %c0_14 = arith.constant 0 : index
    %c0_15 = arith.constant 0 : index
    %c0_16 = arith.constant 0 : index
    %c0_17 = arith.constant 0 : index
    %16 = vector.load %arg7[%c0_14, %c0_15, %c0_16, %c0_17] : memref<1x4x128x8xf32, #tpu.memory_space<vmem>>, vector<1x1x128x8xf32>
    %17 = vector.shape_cast %16 : vector<1x1x128x8xf32> to vector<128x8xf32>
    %18 = vector.shape_cast %15 : vector<128x8xf32> to vector<1x1x128x8xf32>
    tpu.vector_store %arg7[%c0_14, %c0_15, %c0_16, %c0_17], %18 {strides = array<i32>} : memref<1x4x128x8xf32, #tpu.memory_space<vmem>>, vector<1x1x128x8xf32>,
    %19 = vector.extract_strided_slice %6 {offsets = [0, 8], sizes = [128, 8], strides = [1, 1]} : vector<128x96xf32> to vector<128x8xf32>
    %c0_18 = arith.constant 0 : index
    %c1 = arith.constant 1 : index
    %c0_19 = arith.constant 0 : index
    %c0_20 = arith.constant 0 : index
    %20 = vector.load %arg5[%c0_18, %c1, %c0_19, %c0_20] : memref<1x4x128x8xf32, #tpu.memory_space<vmem>>, vector<1x1x128x8xf32>
    %21 = vector.shape_cast %20 : vector<1x1x128x8xf32> to vector<128x8xf32>
    %22 = vector.shape_cast %19 : vector<128x8xf32> to vector<1x1x128x8xf32>
    tpu.vector_store %arg5[%c0_18, %c1, %c0_19, %c0_20], %22 {strides = array<i32>} : memref<1x4x128x8xf32, #tpu.memory_space<vmem>>, vector<1x1x128x8xf32>,
    %23 = vector.extract_strided_slice %6 {offsets = [0, 40], sizes = [128, 8], strides = [1, 1]} : vector<128x96xf32> to vector<128x8xf32>
    %c0_21 = arith.constant 0 : index
    %c1_22 = arith.constant 1 : index
    %c0_23 = arith.constant 0 : index
    %c0_24 = arith.constant 0 : index
    %24 = vector.load %arg6[%c0_21, %c1_22, %c0_23, %c0_24] : memref<1x4x128x8xf32, #tpu.memory_space<vmem>>, vector<1x1x128x8xf32>
    %25 = vector.shape_cast %24 : vector<1x1x128x8xf32> to vector<128x8xf32>
    %26 = vector.shape_cast %23 : vector<128x8xf32> to vector<1x1x128x8xf32>
    tpu.vector_store %arg6[%c0_21, %c1_22, %c0_23, %c0_24], %26 {strides = array<i32>} : memref<1x4x128x8xf32, #tpu.memory_space<vmem>>, vector<1x1x128x8xf32>,
    %27 = vector.extract_strided_slice %6 {offsets = [0, 72], sizes = [128, 8], strides = [1, 1]} : vector<128x96xf32> to vector<128x8xf32>
    %c0_25 = arith.constant 0 : index
    %c1_26 = arith.constant 1 : index
    %c0_27 = arith.constant 0 : index
    %c0_28 = arith.constant 0 : index
    %28 = vector.load %arg7[%c0_25, %c1_26, %c0_27, %c0_28] : memref<1x4x128x8xf32, #tpu.memory_space<vmem>>, vector<1x1x128x8xf32>
    %29 = vector.shape_cast %28 : vector<1x1x128x8xf32> to vector<128x8xf32>
    %30 = vector.shape_cast %27 : vector<128x8xf32> to vector<1x1x128x8xf32>
    tpu.vector_store %arg7[%c0_25, %c1_26, %c0_27, %c0_28], %30 {strides = array<i32>} : memref<1x4x128x8xf32, #tpu.memory_space<vmem>>, vector<1x1x128x8xf32>,
    %31 = vector.extract_strided_slice %6 {offsets = [0, 16], sizes = [128, 8], strides = [1, 1]} : vector<128x96xf32> to vector<128x8xf32>
    %c0_29 = arith.constant 0 : index
    %c2 = arith.constant 2 : index
    %c0_30 = arith.constant 0 : index
    %c0_31 = arith.constant 0 : index
    %32 = vector.load %arg5[%c0_29, %c2, %c0_30, %c0_31] : memref<1x4x128x8xf32, #tpu.memory_space<vmem>>, vector<1x1x128x8xf32>
    %33 = vector.shape_cast %32 : vector<1x1x128x8xf32> to vector<128x8xf32>
    %34 = vector.shape_cast %31 : vector<128x8xf32> to vector<1x1x128x8xf32>
    tpu.vector_store %arg5[%c0_29, %c2, %c0_30, %c0_31], %34 {strides = array<i32>} : memref<1x4x128x8xf32, #tpu.memory_space<vmem>>, vector<1x1x128x8xf32>,
    %35 = vector.extract_strided_slice %6 {offsets = [0, 48], sizes = [128, 8], strides = [1, 1]} : vector<128x96xf32> to vector<128x8xf32>
    %c0_32 = arith.constant 0 : index
    %c2_33 = arith.constant 2 : index
    %c0_34 = arith.constant 0 : index
    %c0_35 = arith.constant 0 : index
    %36 = vector.load %arg6[%c0_32, %c2_33, %c0_34, %c0_35] : memref<1x4x128x8xf32, #tpu.memory_space<vmem>>, vector<1x1x128x8xf32>
    %37 = vector.shape_cast %36 : vector<1x1x128x8xf32> to vector<128x8xf32>
    %38 = vector.shape_cast %35 : vector<128x8xf32> to vector<1x1x128x8xf32>
    tpu.vector_store %arg6[%c0_32, %c2_33, %c0_34, %c0_35], %38 {strides = array<i32>} : memref<1x4x128x8xf32, #tpu.memory_space<vmem>>, vector<1x1x128x8xf32>,
    %39 = vector.extract_strided_slice %6 {offsets = [0, 80], sizes = [128, 8], strides = [1, 1]} : vector<128x96xf32> to vector<128x8xf32>
    %c0_36 = arith.constant 0 : index
    %c2_37 = arith.constant 2 : index
    %c0_38 = arith.constant 0 : index
    %c0_39 = arith.constant 0 : index
    %40 = vector.load %arg7[%c0_36, %c2_37, %c0_38, %c0_39] : memref<1x4x128x8xf32, #tpu.memory_space<vmem>>, vector<1x1x128x8xf32>
    %41 = vector.shape_cast %40 : vector<1x1x128x8xf32> to vector<128x8xf32>
    %42 = vector.shape_cast %39 : vector<128x8xf32> to vector<1x1x128x8xf32>
    tpu.vector_store %arg7[%c0_36, %c2_37, %c0_38, %c0_39], %42 {strides = array<i32>} : memref<1x4x128x8xf32, #tpu.memory_space<vmem>>, vector<1x1x128x8xf32>,
    %43 = vector.extract_strided_slice %6 {offsets = [0, 24], sizes = [128, 8], strides = [1, 1]} : vector<128x96xf32> to vector<128x8xf32>
    %c0_40 = arith.constant 0 : index
    %c3 = arith.constant 3 : index
    %c0_41 = arith.constant 0 : index
    %c0_42 = arith.constant 0 : index
    %44 = vector.load %arg5[%c0_40, %c3, %c0_41, %c0_42] : memref<1x4x128x8xf32, #tpu.memory_space<vmem>>, vector<1x1x128x8xf32>
    %45 = vector.shape_cast %44 : vector<1x1x128x8xf32> to vector<128x8xf32>
    %46 = vector.shape_cast %43 : vector<128x8xf32> to vector<1x1x128x8xf32>
    tpu.vector_store %arg5[%c0_40, %c3, %c0_41, %c0_42], %46 {strides = array<i32>} : memref<1x4x128x8xf32, #tpu.memory_space<vmem>>, vector<1x1x128x8xf32>,
    %47 = vector.extract_strided_slice %6 {offsets = [0, 56], sizes = [128, 8], strides = [1, 1]} : vector<128x96xf32> to vector<128x8xf32>
    %c0_43 = arith.constant 0 : index
    %c3_44 = arith.constant 3 : index
    %c0_45 = arith.constant 0 : index
    %c0_46 = arith.constant 0 : index
    %48 = vector.load %arg6[%c0_43, %c3_44, %c0_45, %c0_46] : memref<1x4x128x8xf32, #tpu.memory_space<vmem>>, vector<1x1x128x8xf32>
    %49 = vector.shape_cast %48 : vector<1x1x128x8xf32> to vector<128x8xf32>
    %50 = vector.shape_cast %47 : vector<128x8xf32> to vector<1x1x128x8xf32>
    tpu.vector_store %arg6[%c0_43, %c3_44, %c0_45, %c0_46], %50 {strides = array<i32>} : memref<1x4x128x8xf32, #tpu.memory_space<vmem>>, vector<1x1x128x8xf32>,
    %51 = vector.extract_strided_slice %6 {offsets = [0, 88], sizes = [128, 8], strides = [1, 1]} : vector<128x96xf32> to vector<128x8xf32>
    %c0_47 = arith.constant 0 : index
    %c3_48 = arith.constant 3 : index
    %c0_49 = arith.constant 0 : index
    %c0_50 = arith.constant 0 : index
    %52 = vector.load %arg7[%c0_47, %c3_48, %c0_49, %c0_50] : memref<1x4x128x8xf32, #tpu.memory_space<vmem>>, vector<1x1x128x8xf32>
    %53 = vector.shape_cast %52 : vector<1x1x128x8xf32> to vector<128x8xf32>
    %54 = vector.shape_cast %51 : vector<128x8xf32> to vector<1x1x128x8xf32>
    tpu.vector_store %arg7[%c0_47, %c3_48, %c0_49, %c0_50], %54 {strides = array<i32>} : memref<1x4x128x8xf32, #tpu.memory_space<vmem>>, vector<1x1x128x8xf32>,
    return
  }
  func.func @transform_0(%arg0: i32, %arg1: i32) -> (i32, i32, i32) {
    %c0_i32 = arith.constant 0 : i32
    %c0_i32_0 = arith.constant 0 : i32
    return %arg0, %arg1, %c0_i32 : i32, i32, i32
  }
  func.func @transform_1(%arg0: i32, %arg1: i32) -> (i32, i32) {
    %c0_i32 = arith.constant 0 : i32
    %c0_i32_0 = arith.constant 0 : i32
    %c0_i32_1 = arith.constant 0 : i32
    return %c0_i32, %c0_i32_0 : i32, i32
  }
  func.func @transform_2(%arg0: i32, %arg1: i32) -> (i32, i32) {
    %c0_i32 = arith.constant 0 : i32
    %c0_i32_0 = arith.constant 0 : i32
    %c0_i32_1 = arith.constant 0 : i32
    return %c0_i32, %c0_i32_0 : i32, i32
  }
  func.func @transform_3(%arg0: i32, %arg1: i32) -> (i32, i32, i32, i32) {
    %c0_i32 = arith.constant 0 : i32
    %c0_i32_0 = arith.constant 0 : i32
    %c0_i32_1 = arith.constant 0 : i32
    return %arg0, %c0_i32, %arg1, %c0_i32_0 : i32, i32, i32, i32
  }
  func.func @transform_4(%arg0: i32, %arg1: i32) -> (i32, i32, i32, i32) {
    %c0_i32 = arith.constant 0 : i32
    %c0_i32_0 = arith.constant 0 : i32
    %c0_i32_1 = arith.constant 0 : i32
    return %arg0, %c0_i32, %arg1, %c0_i32_0 : i32, i32, i32, i32
  }
  func.func @transform_5(%arg0: i32, %arg1: i32) -> (i32, i32, i32, i32) {
    %c0_i32 = arith.constant 0 : i32
    %c0_i32_0 = arith.constant 0 : i32
    %c0_i32_1 = arith.constant 0 : i32
    return %arg0, %c0_i32, %arg1, %c0_i32_0 : i32, i32, i32, i32
  }
}

</mosaic_0001>

<bundles_post_ra>
// kernel: tpu_custom_call.1
= control target key start
LH: loop header
LB: loop body
LE: loop exit
PB: predicated region body
PF: predicated region fallthrough
CT: control target
= control target key end

     0   :  { %s1805_s18 = smov 0   ;;  %s1807_s19 = smov 0   ;;  %s2710_s0 = inlined_call_operand.vmem [shape: f32[2,128,32], index: 0, kind: input, shape index: {}]   ;;  %s2711_s1 = inlined_call_operand.vmem [shape: f32[32,96], index: 1, kind: input, shape index: {}]   ;;  %s2712_s2 = inlined_call_operand.vmem [shape: f32[1,96], index: 2, kind: input, shape index: {}]   ;;  %s2713_s3 = inlined_call_operand.vmem [shape: f32[2,4,128,8], index: 3, kind: output, shape index: {0}]   ;;  %s2714_s4 = inlined_call_operand.vmem [shape: f32[2,4,128,8], index: 4, kind: output, shape index: {1}]   ;;  %s2715_s5 = inlined_call_operand.vmem [shape: f32[2,4,128,8], index: 5, kind: output, shape index: {2}]  }
   0x1   :  { %s1809_s20 = smov 0  }
   0x2 LB: > { %s28_s21 = sadd.s32 1, %s1758_s19  ;;  %p1469_p0 = scmp.ge.s32.totalorder %s1762_s20, 1  ;;  %s1762_s20 = sphi %s1809_s20, %s16_s20   ;;  %s1758_s19 = sphi %s1807_s19, %s2717_s19   ;;  %s1754_s18 = sphi %s1805_s18, %s2716_s18  }
   0x3   : > { %p30_p1 = scmp.ge.s32.totalorder %s28_s21, 2  ;;  %p217_p2 = scmp.lt.s32.totalorder %s1762_s20, 3 }
   0x5   : > { %s2719_s21 = smov (%p30_p1, %s28_s21), 0  ;;  %p218_p3 = pnand %p1469_p0, %p217_p2 }
   0x6   : > { %p272_p4 = scmp.lt.s32.totalorder (!%p218_p3), %s1754_s18, 1  ;;  %s1764_s15 = smov (!%p218_p3), 96  }
   0x7   : > { %221 = sbr.rel (%p218_p3) target bundleno = 681 (0x2a9), region = 32  ;;  %s1765_s16 = smov (!%p218_p3), 64  }
   0x8   : > { %s1766_s17 = smov (!%p218_p3), 120   ;;  %s1768_s22 = smov (!%p218_p3), 56  }
   0x9   : > { %s1769_s23 = smov (!%p218_p3), 112   ;;  %s1770_s24 = smov (!%p218_p3), 80  }
   0xa   : > { %s1771_s6 = smov (!%p218_p3), 48   ;;  %s1772_s7 = smov (!%p218_p3), 104  }
   0xc   : > { %v330_v0 = vld [vmem:[%s2711_s1 + $0x18] sm:$0xff]  ;;  %v329_v1 = vld [vmem:[%s2711_s1 + $0x10] sm:$0xff]  ;;  %v328_v2 = vld [vmem:[%s2711_s1 + $0x8] sm:$0xff]  ;;  %s2721_s18 = smov (!%p272_p4, %s1754_s18), 1  ;;  %vm338_vm0 = vcmask 261120   ;;  %vm532_vm1 = vcmask 64512  }
   0xd   : > { %1665 = vmatprep.subr.mxu0 %v330_v0  ;;  %1697 = vmatprep.subr.mxu1 %v330_v0  ;;  %v327_v3 = vld [vmem:[%s2711_s1] sm:$0xff]  ;;  %s1641_s30 = sshll.u32 %s2721_s18, 7  ;;  %s1876_s9 = sshll.u32 %s2721_s18, 9 }
   0xe   : > { %1666 = vmatpush3.msra.mxu0 %v330_v0  ;;  %1701 = vmatpush3.msra.mxu1 %v330_v0  ;;  %s1841_s8 = scalar_lea.vmem %s2710_s0, %s1641_s30  ;;  %v1881_v20 = vld [vmem:[%s2712_s2] ss:$0 sm:$0xff]  ;;  %s1887_s14 = scalar_lea.vmem %s2713_s3, %s1876_s9 }
   0xf   : > { %1667 = vmatprep.subr.mxu0 %v329_v1  ;;  %1698 = vmatprep.subr.mxu1 %v329_v1  ;;  %v311_v4 = vld [vmem:[%s1841_s8] sm:$0xff]  ;;  %v312_v6 = vld [vmem:[%s1841_s8 + $0x8] sm:$0xff]  ;;  %v313_v8 = vld [vmem:[%s1841_s8 + $0x10] sm:$0xff]  ;;  %s1767_s18 = smov 88   ;;  %s2105_s27 = scalar_lea.vmem %s2714_s4, %s1876_s9 }
  0x10   : > { %1668 = vmatpush3.msra.mxu0 %v329_v1  ;;  %1702 = vmatpush3.msra.mxu1 %v329_v1  ;;  %v319_v5 = vld [vmem:[%s1841_s8 + $0x40] sm:$0xff]  ;;  %v320_v7 = vld [vmem:[%s1841_s8 + $0x48] sm:$0xff]  ;;  %v321_v9 = vld [vmem:[%s1841_s8 + $0x50] sm:$0xff]  ;;  %s2119_s30 = scalar_lea.vmem %s2715_s5, %s1876_s9  ;;  %s1774_s9 = smov 40  }
  0x11   : > { %1669 = vmatprep.subr.mxu0 %v328_v2  ;;  %1699 = vmatprep.subr.mxu1 %v328_v2  ;;  %v314_v10 = vld [vmem:[%s1841_s8 + $0x18] sm:$0xff]  ;;  %v315_v12 = vld [vmem:[%s1841_s8 + $0x20] sm:$0xff]  ;;  %v316_v14 = vld [vmem:[%s1841_s8 + $0x28] sm:$0xff] }
  0x12   : > { %1670 = vmatpush3.msra.mxu0 %v328_v2  ;;  %1703 = vmatpush3.msra.mxu1 %v328_v2  ;;  %v322_v11 = vld [vmem:[%s1841_s8 + $0x58] sm:$0xff]  ;;  %v323_v13 = vld [vmem:[%s1841_s8 + $0x60] sm:$0xff]  ;;  %v324_v15 = vld [vmem:[%s1841_s8 + $0x68] sm:$0xff] }
  0x13   : > { %1671 = vmatprep.subr.mxu0 %v327_v3  ;;  %1700 = vmatprep.subr.mxu1 %v327_v3  ;;  %v317_v16 = vld [vmem:[%s1841_s8 + $0x30] sm:$0xff]  ;;  %v318_v18 = vld [vmem:[%s1841_s8 + $0x38] sm:$0xff] }
  0x14   : > { %1672 = vmatpush3.msra.mxu0 %v327_v3  ;;  %1704 = vmatpush3.msra.mxu1 %v327_v3  ;;  %v325_v17 = vld [vmem:[%s1841_s8 + $0x70] sm:$0xff]  ;;  %v326_v19 = vld [vmem:[%s1841_s8 + $0x78] sm:$0xff]  ;;  %s1773_s8 = smov 72  }
  0x15   : > { %1673 = vmatprep.mubr.msk.f32.mxu0 %vm338_vm0, %v311_v4  ;;  %1685 = vmatprep.mubr.msk.f32.mxu1 %vm338_vm0, %v319_v5 }
  0x16   : > { %1674 = vmatmul.mubr.msk.f32.vlgmr.msra.gmra.mxu0 %vm338_vm0, %v312_v6  ;;  %1686 = vmatmul.mubr.msk.f32.vlgmr.msra.gmra.mxu1 %vm338_vm0, %v320_v7 }
  0x17   : > { %1676 = vmatprep.mubr.msk.f32.mxu0 %vm338_vm0, %v313_v8  ;;  %1688 = vmatprep.mubr.msk.f32.mxu1 %vm338_vm0, %v321_v9 }
  0x1a   : > { %1677 = vmatmul.mubr.msk.f32.gmra.mxu0 %vm338_vm0, %v314_v10  ;;  %1689 = vmatmul.mubr.msk.f32.gmra.mxu1 %vm338_vm0, %v322_v11 }
  0x1b   : > { %1679 = vmatprep.mubr.msk.f32.mxu0 %vm338_vm0, %v315_v12  ;;  %1691 = vmatprep.mubr.msk.f32.mxu1 %vm338_vm0, %v323_v13 }
  0x1e   : > { %1680 = vmatmul.mubr.msk.f32.gmra.mxu0 %vm338_vm0, %v316_v14  ;;  %1692 = vmatmul.mubr.msk.f32.gmra.mxu1 %vm338_vm0, %v324_v15 }
  0x1f   : > { %1682 = vmatprep.mubr.msk.f32.mxu0 %vm338_vm0, %v317_v16  ;;  %1694 = vmatprep.mubr.msk.f32.mxu1 %vm338_vm0, %v325_v17 }
  0x22   : > { %1683 = vmatmul.mubr.msk.f32.gmra.mxu0 %vm338_vm0, %v318_v18  ;;  %1695 = vmatmul.mubr.msk.f32.gmra.mxu1 %vm338_vm0, %v326_v19 }
  0xd6   : > { %v1675_v21 = vpop.f32.mrf.mxu0  ;;  %v1687_v22 = vpop.f32.mrf.mxu1 }
  0xd7   : > { %v1890_v23 = vadd.f32 %v1675_v21, %v1881_v20  ;;  %v1893_v24 = vadd.f32 %v1687_v22, %v1881_v20 }
  0xd8   : > { %v453_v25 = vpop.f32.mrf.mxu0  ;;  %v493_v26 = vpop.f32.mrf.mxu1 }
  0xd9   : > { %534 = vst.msk [vmem:[%s1887_s14 + $0x8] sm:$0xff] %vm532_vm1, %v1890_v23  ;;  %542 = vst.msk [vmem:[%s1887_s14 + $0x48] sm:$0xff] %vm532_vm1, %v1893_v24  ;;  %v1902_v27 = vadd.f32 %v1881_v20, %v453_v25  ;;  %v1905_v28 = vadd.f32 %v1881_v20, %v493_v26  ;;  %583 = vrot.lane.b32.xlu1 %v1893_v24, %s1764_s15  ;;  %567 = vrot.lane.b32.xlu0 %v1890_v23, %s1764_s15 }
  0xda   : > { %v1678_v29 = vpop.f32.mrf.mxu0  ;;  %v1690_v30 = vpop.f32.mrf.mxu1 }
  0xdb   : > { %533 = vst.msk [vmem:[%s1887_s14] sm:$0xff] %vm532_vm1, %v1902_v27  ;;  %541 = vst.msk [vmem:[%s1887_s14 + $0x40] sm:$0xff] %vm532_vm1, %v1905_v28  ;;  %v1918_v31 = vadd.f32 %v1678_v29, %v1881_v20  ;;  %v1921_v32 = vadd.f32 %v1690_v30, %v1881_v20 }
  0xdc   : > { %v463_v33 = vpop.f32.mrf.mxu0  ;;  %v503_v34 = vpop.f32.mrf.mxu1 }
  0xdd   : > { %631 = vrot.lane.b32.xlu1 %v1890_v23, %s1765_s16  ;;  %565 = vrot.lane.b32.xlu0 %v1902_v27, %s1764_s15  ;;  %536 = vst.msk [vmem:[%s1887_s14 + $0x18] sm:$0xff] %vm532_vm1, %v1918_v31  ;;  %v1931_v35 = vadd.f32 %v1881_v20, %v463_v33  ;;  %544 = vst.msk [vmem:[%s1887_s14 + $0x58] sm:$0xff] %vm532_vm1, %v1921_v32  ;;  %v1937_v36 = vadd.f32 %v1881_v20, %v503_v34 }
  0xde   : > { %v1681_v37 = vpop.f32.mrf.mxu0  ;;  %v1693_v38 = vpop.f32.mrf.mxu1 }
  0xdf   : > { %535 = vst.msk [vmem:[%s1887_s14 + $0x10] sm:$0xff] %vm532_vm1, %v1931_v35  ;;  %543 = vst.msk [vmem:[%s1887_s14 + $0x50] sm:$0xff] %vm532_vm1, %v1937_v36  ;;  %v1946_v39 = vadd.f32 %v1681_v37, %v1881_v20  ;;  %v1949_v40 = vadd.f32 %v1693_v38, %v1881_v20 }
  0xe0   : > { %v473_v41 = vpop.f32.mrf.mxu0  ;;  %v513_v42 = vpop.f32.mrf.mxu1 }
  0xe1   : > { %647 = vrot.lane.b32.xlu1 %v1893_v24, %s1765_s16  ;;  %581 = vrot.lane.b32.xlu0 %v1905_v28, %s1764_s15  ;;  %538 = vst.msk [vmem:[%s1887_s14 + $0x28] sm:$0xff] %vm532_vm1, %v1946_v39  ;;  %v1959_v43 = vadd.f32 %v1881_v20, %v473_v41  ;;  %546 = vst.msk [vmem:[%s1887_s14 + $0x68] sm:$0xff] %vm532_vm1, %v1949_v40  ;;  %v1965_v44 = vadd.f32 %v1881_v20, %v513_v42 }
  0xe2   : > { %v1684_v45 = vpop.f32.mrf.mxu0  ;;  %v1696_v49 = vpop.f32.mrf.mxu1 }
  0xe3   : > { %537 = vst.msk [vmem:[%s1887_s14 + $0x20] sm:$0xff] %vm532_vm1, %v1959_v43  ;;  %545 = vst.msk [vmem:[%s1887_s14 + $0x60] sm:$0xff] %vm532_vm1, %v1965_v44  ;;  %v1998_v46 = vadd.f32 %v1684_v45, %v1881_v20  ;;  %v2011_v50 = vadd.f32 %v1696_v49, %v1881_v20 }
  0xe4   : > { %v483_v47 = vpop.f32.mrf.mxu0  ;;  %v523_v51 = vpop.f32.mrf.mxu1 }
  0xe5   : > { %695 = vrot.lane.b32.xlu1 %v1890_v23, %s1766_s17  ;;  %629 = vrot.lane.b32.xlu0 %v1902_v27, %s1765_s16  ;;  %540 = vst.msk [vmem:[%s1887_s14 + $0x38] sm:$0xff] %vm532_vm1, %v1998_v46  ;;  %v2008_v48 = vadd.f32 %v1881_v20, %v483_v47  ;;  %548 = vst.msk [vmem:[%s1887_s14 + $0x78] sm:$0xff] %vm532_vm1, %v2011_v50  ;;  %v2024_v52 = vadd.f32 %v1881_v20, %v523_v51 }
  0xe7   : > { %539 = vst.msk [vmem:[%s1887_s14 + $0x30] sm:$0xff] %vm532_vm1, %v2008_v48  ;;  %547 = vst.msk [vmem:[%s1887_s14 + $0x70] sm:$0xff] %vm532_vm1, %v2024_v52 }
  0xe9   : > { %711 = vrot.lane.b32.xlu1 %v1893_v24, %s1766_s17  ;;  %645 = vrot.lane.b32.xlu0 %v1905_v28, %s1765_s16 }
  0xed   : > { %760 = vrot.lane.b32.xlu1 %v1890_v23, %s1767_s18  ;;  %693 = vrot.lane.b32.xlu0 %v1902_v27, %s1766_s17 }
  0xf1   : > { %776 = vrot.lane.b32.xlu1 %v1893_v24, %s1767_s18  ;;  %709 = vrot.lane.b32.xlu0 %v1905_v28, %s1766_s17 }
  0xf5   : > { %825 = vrot.lane.b32.xlu1 %v1890_v23, %s1768_s22  ;;  %758 = vrot.lane.b32.xlu0 %v1902_v27, %s1767_s18 }
  0xf9   : > { %841 = vrot.lane.b32.xlu1 %v1893_v24, %s1768_s22  ;;  %774 = vrot.lane.b32.xlu0 %v1905_v28, %s1767_s18 }
  0xfd   : > { %890 = vrot.lane.b32.xlu1 %v1890_v23, %s1769_s23  ;;  %823 = vrot.lane.b32.xlu0 %v1902_v27, %s1768_s22 }
 0x101   : > { %906 = vrot.lane.b32.xlu1 %v1893_v24, %s1769_s23  ;;  %839 = vrot.lane.b32.xlu0 %v1905_v28, %s1768_s22 }
 0x105   : > { %955 = vrot.lane.b32.xlu1 %v1890_v23, %s1770_s24  ;;  %888 = vrot.lane.b32.xlu0 %v1902_v27, %s1769_s23 }
 0x109   : > { %971 = vrot.lane.b32.xlu1 %v1893_v24, %s1770_s24  ;;  %904 = vrot.lane.b32.xlu0 %v1905_v28, %s1769_s23 }
 0x10d   : > { %571 = vrot.lane.b32.xlu1 %v1918_v31, %s1764_s15  ;;  %953 = vrot.lane.b32.xlu0 %v1902_v27, %s1770_s24 }
 0x111   : > { %587 = vrot.lane.b32.xlu1 %v1921_v32, %s1764_s15  ;;  %969 = vrot.lane.b32.xlu0 %v1905_v28, %s1770_s24 }
 0x115   : > { %635 = vrot.lane.b32.xlu1 %v1918_v31, %s1765_s16  ;;  %585 = vrot.lane.b32.xlu0 %v1937_v36, %s1764_s15 }
 0x119   : > { %651 = vrot.lane.b32.xlu1 %v1921_v32, %s1765_s16  ;;  %633 = vrot.lane.b32.xlu0 %v1931_v35, %s1765_s16 }
 0x11d   : > { %699 = vrot.lane.b32.xlu1 %v1918_v31, %s1766_s17  ;;  %649 = vrot.lane.b32.xlu0 %v1937_v36, %s1765_s16 }
 0x121   : > { %715 = vrot.lane.b32.xlu1 %v1921_v32, %s1766_s17  ;;  %697 = vrot.lane.b32.xlu0 %v1931_v35, %s1766_s17 }
 0x125   : > { %764 = vrot.lane.b32.xlu1 %v1918_v31, %s1767_s18  ;;  %713 = vrot.lane.b32.xlu0 %v1937_v36, %s1766_s17 }
 0x129   : > { %780 = vrot.lane.b32.xlu1 %v1921_v32, %s1767_s18  ;;  %762 = vrot.lane.b32.xlu0 %v1931_v35, %s1767_s18 }
 0x12d   : > { %829 = vrot.lane.b32.xlu1 %v1918_v31, %s1768_s22  ;;  %778 = vrot.lane.b32.xlu0 %v1937_v36, %s1767_s18 }
 0x131   : > { %845 = vrot.lane.b32.xlu1 %v1921_v32, %s1768_s22  ;;  %827 = vrot.lane.b32.xlu0 %v1931_v35, %s1768_s22 }
 0x135   : > { %894 = vrot.lane.b32.xlu1 %v1918_v31, %s1769_s23  ;;  %843 = vrot.lane.b32.xlu0 %v1937_v36, %s1768_s22 }
 0x139   : > { %910 = vrot.lane.b32.xlu1 %v1921_v32, %s1769_s23  ;;  %892 = vrot.lane.b32.xlu0 %v1931_v35, %s1769_s23 }
 0x13d   : > { %959 = vrot.lane.b32.xlu1 %v1918_v31, %s1770_s24  ;;  %908 = vrot.lane.b32.xlu0 %v1937_v36, %s1769_s23 }
 0x141   : > { %975 = vrot.lane.b32.xlu1 %v1921_v32, %s1770_s24  ;;  %957 = vrot.lane.b32.xlu0 %v1931_v35, %s1770_s24 }
 0x145   : > { %569 = vrot.lane.b32.xlu1 %v1931_v35, %s1764_s15  ;;  %973 = vrot.lane.b32.xlu0 %v1937_v36, %s1770_s24 }
 0x149   : > { %575 = vrot.lane.b32.xlu1 %v1946_v39, %s1764_s15  ;;  %573 = vrot.lane.b32.xlu0 %v1959_v43, %s1764_s15 }
 0x14b   : > { %v584_v53 = vpop.permute.xlu1 %583  ;;  %v568_v54 = vpop.permute.xlu0 %567 }
 0x14c   : > { %622 = vst.msk [vmem:[%s2105_s27 + $0x48] sm:$0xff] %vm532_vm1, %v584_v53  ;;  %614 = vst.msk [vmem:[%s2105_s27 + $0x8] sm:$0xff] %vm532_vm1, %v568_v54 }
 0x14d   : > { %591 = vrot.lane.b32.xlu1 %v1949_v40, %s1764_s15  ;;  %589 = vrot.lane.b32.xlu0 %v1965_v44, %s1764_s15 }
 0x14f   : > { %v632_v55 = vpop.permute.xlu1 %631  ;;  %v566_v56 = vpop.permute.xlu0 %565 }
 0x150   : > { %678 = vst.msk [vmem:[%s2119_s30 + $0x8] sm:$0xff] %vm532_vm1, %v632_v55  ;;  %613 = vst.msk [vmem:[%s2105_s27] sm:$0xff] %vm532_vm1, %v566_v56 }
 0x151   : > { %639 = vrot.lane.b32.xlu1 %v1946_v39, %s1765_s16  ;;  %637 = vrot.lane.b32.xlu0 %v1959_v43, %s1765_s16 }
 0x153   : > { %v648_v57 = vpop.permute.xlu1 %647  ;;  %v582_v58 = vpop.permute.xlu0 %581 }
 0x154   : > { %686 = vst.msk [vmem:[%s2119_s30 + $0x48] sm:$0xff] %vm532_vm1, %v648_v57  ;;  %621 = vst.msk [vmem:[%s2105_s27 + $0x40] sm:$0xff] %vm532_vm1, %v582_v58 }
 0x155   : > { %655 = vrot.lane.b32.xlu1 %v1949_v40, %s1765_s16  ;;  %653 = vrot.lane.b32.xlu0 %v1965_v44, %s1765_s16 }
 0x157   : > { %v696_v59 = vpop.permute.xlu1 %695  ;;  %v630_v60 = vpop.permute.xlu0 %629 }
 0x158   : > { %1496 = vst.msk [vmem:[%s1887_s14 + $0x88] sm:$0xff] %vm532_vm1, %v696_v59  ;;  %677 = vst.msk [vmem:[%s2119_s30] sm:$0xff] %vm532_vm1, %v630_v60 }
 0x159   : > { %703 = vrot.lane.b32.xlu1 %v1946_v39, %s1766_s17  ;;  %701 = vrot.lane.b32.xlu0 %v1959_v43, %s1766_s17 }
 0x15b   : > { %v712_v61 = vpop.permute.xlu1 %711  ;;  %v646_v62 = vpop.permute.xlu0 %645 }
 0x15c   : > { %1504 = vst.msk [vmem:[%s1887_s14 + $0xc8] sm:$0xff] %vm532_vm1, %v712_v61  ;;  %685 = vst.msk [vmem:[%s2119_s30 + $0x40] sm:$0xff] %vm532_vm1, %v646_v62 }
 0x15d   : > { %719 = vrot.lane.b32.xlu1 %v1949_v40, %s1766_s17  ;;  %717 = vrot.lane.b32.xlu0 %v1965_v44, %s1766_s17 }
 0x15f   : > { %v761_v63 = vpop.permute.xlu1 %760  ;;  %v694_v0 = vpop.permute.xlu0 %693 }
 0x160   : > { %1512 = vst.msk [vmem:[%s2105_s27 + $0x88] sm:$0xff] %vm532_vm1, %v761_v63  ;;  %1495 = vst.msk [vmem:[%s1887_s14 + $0x80] sm:$0xff] %vm532_vm1, %v694_v0 }
 0x161   : > { %768 = vrot.lane.b32.xlu1 %v1946_v39, %s1767_s18  ;;  %766 = vrot.lane.b32.xlu0 %v1959_v43, %s1767_s18 }
 0x163   : > { %v777_v1 = vpop.permute.xlu1 %776  ;;  %v710_v2 = vpop.permute.xlu0 %709 }
 0x164   : > { %1520 = vst.msk [vmem:[%s2105_s27 + $0xc8] sm:$0xff] %vm532_vm1, %v777_v1  ;;  %1503 = vst.msk [vmem:[%s1887_s14 + $0xc0] sm:$0xff] %vm532_vm1, %v710_v2 }
 0x165   : > { %784 = vrot.lane.b32.xlu1 %v1949_v40, %s1767_s18  ;;  %782 = vrot.lane.b32.xlu0 %v1965_v44, %s1767_s18 }
 0x167   : > { %v826_v3 = vpop.permute.xlu1 %825  ;;  %v759_v4 = vpop.permute.xlu0 %758 }
 0x168   : > { %1528 = vst.msk [vmem:[%s2119_s30 + $0x88] sm:$0xff] %vm532_vm1, %v826_v3  ;;  %1511 = vst.msk [vmem:[%s2105_s27 + $0x80] sm:$0xff] %vm532_vm1, %v759_v4 }
 0x169   : > { %833 = vrot.lane.b32.xlu1 %v1946_v39, %s1768_s22  ;;  %831 = vrot.lane.b32.xlu0 %v1959_v43, %s1768_s22 }
 0x16b   : > { %v842_v5 = vpop.permute.xlu1 %841  ;;  %v775_v6 = vpop.permute.xlu0 %774 }
 0x16c   : > { %1536 = vst.msk [vmem:[%s2119_s30 + $0xc8] sm:$0xff] %vm532_vm1, %v842_v5  ;;  %1519 = vst.msk [vmem:[%s2105_s27 + $0xc0] sm:$0xff] %vm532_vm1, %v775_v6 }
 0x16d   : > { %849 = vrot.lane.b32.xlu1 %v1949_v40, %s1768_s22  ;;  %847 = vrot.lane.b32.xlu0 %v1965_v44, %s1768_s22 }
 0x16f   : > { %v891_v7 = vpop.permute.xlu1 %890  ;;  %v824_v8 = vpop.permute.xlu0 %823 }
 0x170   : > { %1544 = vst.msk [vmem:[%s1887_s14 + $0x108] sm:$0xff] %vm532_vm1, %v891_v7  ;;  %1527 = vst.msk [vmem:[%s2119_s30 + $0x80] sm:$0xff] %vm532_vm1, %v824_v8 }
 0x171   : > { %898 = vrot.lane.b32.xlu1 %v1946_v39, %s1769_s23  ;;  %896 = vrot.lane.b32.xlu0 %v1959_v43, %s1769_s23 }
 0x173   : > { %v907_v9 = vpop.permute.xlu1 %906  ;;  %v840_v10 = vpop.permute.xlu0 %839 }
 0x174   : > { %1552 = vst.msk [vmem:[%s1887_s14 + $0x148] sm:$0xff] %vm532_vm1, %v907_v9  ;;  %1535 = vst.msk [vmem:[%s2119_s30 + $0xc0] sm:$0xff] %vm532_vm1, %v840_v10 }
 0x175   : > { %914 = vrot.lane.b32.xlu1 %v1949_v40, %s1769_s23  ;;  %912 = vrot.lane.b32.xlu0 %v1965_v44, %s1769_s23 }
 0x177   : > { %v956_v11 = vpop.permute.xlu1 %955  ;;  %v889_v12 = vpop.permute.xlu0 %888 }
 0x178   : > { %1560 = vst.msk [vmem:[%s2105_s27 + $0x108] sm:$0xff] %vm532_vm1, %v956_v11  ;;  %1543 = vst.msk [vmem:[%s1887_s14 + $0x100] sm:$0xff] %vm532_vm1, %v889_v12 }
 0x179   : > { %963 = vrot.lane.b32.xlu1 %v1946_v39, %s1770_s24  ;;  %961 = vrot.lane.b32.xlu0 %v1959_v43, %s1770_s24 }
 0x17b   : > { %v972_v13 = vpop.permute.xlu1 %971  ;;  %v905_v14 = vpop.permute.xlu0 %904 }
 0x17c   : > { %1568 = vst.msk [vmem:[%s2105_s27 + $0x148] sm:$0xff] %vm532_vm1, %v972_v13  ;;  %1551 = vst.msk [vmem:[%s1887_s14 + $0x140] sm:$0xff] %vm532_vm1, %v905_v14 }
 0x17d   : > { %979 = vrot.lane.b32.xlu1 %v1949_v40, %s1770_s24  ;;  %977 = vrot.lane.b32.xlu0 %v1965_v44, %s1770_s24 }
 0x17f   : > { %v572_v15 = vpop.permute.xlu1 %571  ;;  %v954_v16 = vpop.permute.xlu0 %953 }
 0x180   : > { %616 = vst.msk [vmem:[%s2105_s27 + $0x18] sm:$0xff] %vm532_vm1, %v572_v15  ;;  %1559 = vst.msk [vmem:[%s2105_s27 + $0x100] sm:$0xff] %vm532_vm1, %v954_v16 }
 0x181   : > { %579 = vrot.lane.b32.xlu1 %v1998_v46, %s1764_s15  ;;  %577 = vrot.lane.b32.xlu0 %v2008_v48, %s1764_s15 }
 0x183   : > { %v588_v17 = vpop.permute.xlu1 %587  ;;  %v970_v18 = vpop.permute.xlu0 %969 }
 0x184   : > { %624 = vst.msk [vmem:[%s2105_s27 + $0x58] sm:$0xff] %vm532_vm1, %v588_v17  ;;  %1567 = vst.msk [vmem:[%s2105_s27 + $0x140] sm:$0xff] %vm532_vm1, %v970_v18 }
 0x185   : > { %595 = vrot.lane.b32.xlu1 %v2011_v50, %s1764_s15  ;;  %593 = vrot.lane.b32.xlu0 %v2024_v52, %s1764_s15 }
 0x187   : > { %v636_v19 = vpop.permute.xlu1 %635  ;;  %v586_v20 = vpop.permute.xlu0 %585 }
 0x188   : > { %680 = vst.msk [vmem:[%s2119_s30 + $0x18] sm:$0xff] %vm532_vm1, %v636_v19  ;;  %623 = vst.msk [vmem:[%s2105_s27 + $0x50] sm:$0xff] %vm532_vm1, %v586_v20 }
 0x189   : > { %643 = vrot.lane.b32.xlu1 %v1998_v46, %s1765_s16  ;;  %641 = vrot.lane.b32.xlu0 %v2008_v48, %s1765_s16 }
 0x18b   : > { %v652_v21 = vpop.permute.xlu1 %651  ;;  %v634_v22 = vpop.permute.xlu0 %633 }
 0x18c   : > { %688 = vst.msk [vmem:[%s2119_s30 + $0x58] sm:$0xff] %vm532_vm1, %v652_v21  ;;  %679 = vst.msk [vmem:[%s2119_s30 + $0x10] sm:$0xff] %vm532_vm1, %v634_v22 }
 0x18d   : > { %659 = vrot.lane.b32.xlu1 %v2011_v50, %s1765_s16  ;;  %657 = vrot.lane.b32.xlu0 %v2024_v52, %s1765_s16 }
 0x18f   : > { %v700_v25 = vpop.permute.xlu1 %699  ;;  %v650_v26 = vpop.permute.xlu0 %649 }
 0x190   : > { %1498 = vst.msk [vmem:[%s1887_s14 + $0x98] sm:$0xff] %vm532_vm1, %v700_v25  ;;  %687 = vst.msk [vmem:[%s2119_s30 + $0x50] sm:$0xff] %vm532_vm1, %v650_v26 }
 0x191   : > { %707 = vrot.lane.b32.xlu1 %v1998_v46, %s1766_s17  ;;  %705 = vrot.lane.b32.xlu0 %v2008_v48, %s1766_s17 }
 0x193   : > { %v716_v29 = vpop.permute.xlu1 %715  ;;  %v698_v30 = vpop.permute.xlu0 %697 }
 0x194   : > { %1506 = vst.msk [vmem:[%s1887_s14 + $0xd8] sm:$0xff] %vm532_vm1, %v716_v29  ;;  %1497 = vst.msk [vmem:[%s1887_s14 + $0x90] sm:$0xff] %vm532_vm1, %v698_v30 }
 0x195   : > { %723 = vrot.lane.b32.xlu1 %v2011_v50, %s1766_s17  ;;  %721 = vrot.lane.b32.xlu0 %v2024_v52, %s1766_s17 }
 0x197   : > { %v765_v33 = vpop.permute.xlu1 %764  ;;  %v714_v34 = vpop.permute.xlu0 %713 }
 0x198   : > { %1514 = vst.msk [vmem:[%s2105_s27 + $0x98] sm:$0xff] %vm532_vm1, %v765_v33  ;;  %1505 = vst.msk [vmem:[%s1887_s14 + $0xd0] sm:$0xff] %vm532_vm1, %v714_v34 }
 0x199   : > { %772 = vrot.lane.b32.xlu1 %v1998_v46, %s1767_s18  ;;  %770 = vrot.lane.b32.xlu0 %v2008_v48, %s1767_s18 }
 0x19b   : > { %v781_v37 = vpop.permute.xlu1 %780  ;;  %v763_v38 = vpop.permute.xlu0 %762 }
 0x19c   : > { %1522 = vst.msk [vmem:[%s2105_s27 + $0xd8] sm:$0xff] %vm532_vm1, %v781_v37  ;;  %1513 = vst.msk [vmem:[%s2105_s27 + $0x90] sm:$0xff] %vm532_vm1, %v763_v38 }
 0x19d   : > { %788 = vrot.lane.b32.xlu1 %v2011_v50, %s1767_s18  ;;  %786 = vrot.lane.b32.xlu0 %v2024_v52, %s1767_s18 }
 0x19f   : > { %v830_v41 = vpop.permute.xlu1 %829  ;;  %v779_v42 = vpop.permute.xlu0 %778 }
 0x1a0   : > { %1530 = vst.msk [vmem:[%s2119_s30 + $0x98] sm:$0xff] %vm532_vm1, %v830_v41  ;;  %1521 = vst.msk [vmem:[%s2105_s27 + $0xd0] sm:$0xff] %vm532_vm1, %v779_v42 }
 0x1a1   : > { %837 = vrot.lane.b32.xlu1 %v1998_v46, %s1768_s22  ;;  %835 = vrot.lane.b32.xlu0 %v2008_v48, %s1768_s22 }
 0x1a3   : > { %v846_v45 = vpop.permute.xlu1 %845  ;;  %v828_v47 = vpop.permute.xlu0 %827 }
 0x1a4   : > { %1538 = vst.msk [vmem:[%s2119_s30 + $0xd8] sm:$0xff] %vm532_vm1, %v846_v45  ;;  %1529 = vst.msk [vmem:[%s2119_s30 + $0x90] sm:$0xff] %vm532_vm1, %v828_v47 }
 0x1a5   : > { %853 = vrot.lane.b32.xlu1 %v2011_v50, %s1768_s22  ;;  %851 = vrot.lane.b32.xlu0 %v2024_v52, %s1768_s22 }
 0x1a7   : > { %v895_v49 = vpop.permute.xlu1 %894  ;;  %v844_v51 = vpop.permute.xlu0 %843 }
 0x1a8   : > { %1546 = vst.msk [vmem:[%s1887_s14 + $0x118] sm:$0xff] %vm532_vm1, %v895_v49  ;;  %1537 = vst.msk [vmem:[%s2119_s30 + $0xd0] sm:$0xff] %vm532_vm1, %v844_v51 }
 0x1a9   : > { %902 = vrot.lane.b32.xlu1 %v1998_v46, %s1769_s23  ;;  %900 = vrot.lane.b32.xlu0 %v2008_v48, %s1769_s23 }
 0x1ab   : > { %v911_v53 = vpop.permute.xlu1 %910  ;;  %v893_v54 = vpop.permute.xlu0 %892 }
 0x1ac   : > { %1554 = vst.msk [vmem:[%s1887_s14 + $0x158] sm:$0xff] %vm532_vm1, %v911_v53  ;;  %1545 = vst.msk [vmem:[%s1887_s14 + $0x110] sm:$0xff] %vm532_vm1, %v893_v54 }
 0x1ad   : > { %918 = vrot.lane.b32.xlu1 %v2011_v50, %s1769_s23  ;;  %916 = vrot.lane.b32.xlu0 %v2024_v52, %s1769_s23 }
 0x1af   : > { %v960_v55 = vpop.permute.xlu1 %959  ;;  %v909_v56 = vpop.permute.xlu0 %908 }
 0x1b0   : > { %1562 = vst.msk [vmem:[%s2105_s27 + $0x118] sm:$0xff] %vm532_vm1, %v960_v55  ;;  %1553 = vst.msk [vmem:[%s1887_s14 + $0x150] sm:$0xff] %vm532_vm1, %v909_v56 }
 0x1b1   : > { %967 = vrot.lane.b32.xlu1 %v1998_v46, %s1770_s24  ;;  %965 = vrot.lane.b32.xlu0 %v2008_v48, %s1770_s24 }
 0x1b3   : > { %v976_v57 = vpop.permute.xlu1 %975  ;;  %v958_v58 = vpop.permute.xlu0 %957 }
 0x1b4   : > { %1570 = vst.msk [vmem:[%s2105_s27 + $0x158] sm:$0xff] %vm532_vm1, %v976_v57  ;;  %1561 = vst.msk [vmem:[%s2105_s27 + $0x110] sm:$0xff] %vm532_vm1, %v958_v58 }
 0x1b5   : > { %983 = vrot.lane.b32.xlu1 %v2011_v50, %s1770_s24  ;;  %981 = vrot.lane.b32.xlu0 %v2024_v52, %s1770_s24 }
 0x1b7   : > { %v570_v59 = vpop.permute.xlu1 %569  ;;  %v974_v60 = vpop.permute.xlu0 %973 }
 0x1b8   : > { %615 = vst.msk [vmem:[%s2105_s27 + $0x10] sm:$0xff] %vm532_vm1, %v570_v59  ;;  %1569 = vst.msk [vmem:[%s2105_s27 + $0x150] sm:$0xff] %vm532_vm1, %v974_v60 }
 0x1b9   : > { %1020 = vrot.lane.b32.xlu1 %v1890_v23, %s1771_s6  ;;  %1018 = vrot.lane.b32.xlu0 %v1902_v27, %s1771_s6 }
 0x1bb   : > { %v576_v61 = vpop.permute.xlu1 %575  ;;  %v574_v62 = vpop.permute.xlu0 %573 }
 0x1bc   : > { %618 = vst.msk [vmem:[%s2105_s27 + $0x28] sm:$0xff] %vm532_vm1, %v576_v61  ;;  %617 = vst.msk [vmem:[%s2105_s27 + $0x20] sm:$0xff] %vm532_vm1, %v574_v62 }
 0x1bd   : > { %1024 = vrot.lane.b32.xlu1 %v1918_v31, %s1771_s6  ;;  %1022 = vrot.lane.b32.xlu0 %v1931_v35, %s1771_s6 }
 0x1bf   : > { %v592_v63 = vpop.permute.xlu1 %591  ;;  %v590_v0 = vpop.permute.xlu0 %589 }
 0x1c0   : > { %626 = vst.msk [vmem:[%s2105_s27 + $0x68] sm:$0xff] %vm532_vm1, %v592_v63  ;;  %625 = vst.msk [vmem:[%s2105_s27 + $0x60] sm:$0xff] %vm532_vm1, %v590_v0 }
 0x1c1   : > { %1028 = vrot.lane.b32.xlu1 %v1946_v39, %s1771_s6  ;;  %1026 = vrot.lane.b32.xlu0 %v1959_v43, %s1771_s6 }
 0x1c3   : > { %v640_v1 = vpop.permute.xlu1 %639  ;;  %v638_v2 = vpop.permute.xlu0 %637 }
 0x1c4   : > { %682 = vst.msk [vmem:[%s2119_s30 + $0x28] sm:$0xff] %vm532_vm1, %v640_v1  ;;  %681 = vst.msk [vmem:[%s2119_s30 + $0x20] sm:$0xff] %vm532_vm1, %v638_v2 }
 0x1c5   : > { %1032 = vrot.lane.b32.xlu1 %v1998_v46, %s1771_s6  ;;  %1030 = vrot.lane.b32.xlu0 %v2008_v48, %s1771_s6 }
 0x1c7   : > { %v656_v3 = vpop.permute.xlu1 %655  ;;  %v654_v4 = vpop.permute.xlu0 %653 }
 0x1c8   : > { %690 = vst.msk [vmem:[%s2119_s30 + $0x68] sm:$0xff] %vm532_vm1, %v656_v3  ;;  %689 = vst.msk [vmem:[%s2119_s30 + $0x60] sm:$0xff] %vm532_vm1, %v654_v4 }
 0x1c9   : > { %1036 = vrot.lane.b32.xlu1 %v1893_v24, %s1771_s6  ;;  %1034 = vrot.lane.b32.xlu0 %v1905_v28, %s1771_s6 }
 0x1cb   : > { %v704_v5 = vpop.permute.xlu1 %703  ;;  %v702_v6 = vpop.permute.xlu0 %701 }
 0x1cc   : > { %1500 = vst.msk [vmem:[%s1887_s14 + $0xa8] sm:$0xff] %vm532_vm1, %v704_v5  ;;  %1499 = vst.msk [vmem:[%s1887_s14 + $0xa0] sm:$0xff] %vm532_vm1, %v702_v6 }
 0x1cd   : > { %1040 = vrot.lane.b32.xlu1 %v1921_v32, %s1771_s6  ;;  %1038 = vrot.lane.b32.xlu0 %v1937_v36, %s1771_s6 }
 0x1cf   : > { %v720_v7 = vpop.permute.xlu1 %719  ;;  %v718_v8 = vpop.permute.xlu0 %717 }
 0x1d0   : > { %1508 = vst.msk [vmem:[%s1887_s14 + $0xe8] sm:$0xff] %vm532_vm1, %v720_v7  ;;  %1507 = vst.msk [vmem:[%s1887_s14 + $0xe0] sm:$0xff] %vm532_vm1, %v718_v8 }
 0x1d1   : > { %1044 = vrot.lane.b32.xlu1 %v1949_v40, %s1771_s6  ;;  %1042 = vrot.lane.b32.xlu0 %v1965_v44, %s1771_s6 }
 0x1d3   : > { %v769_v9 = vpop.permute.xlu1 %768  ;;  %v767_v10 = vpop.permute.xlu0 %766 }
 0x1d4   : > { %1516 = vst.msk [vmem:[%s2105_s27 + $0xa8] sm:$0xff] %vm532_vm1, %v769_v9  ;;  %1515 = vst.msk [vmem:[%s2105_s27 + $0xa0] sm:$0xff] %vm532_vm1, %v767_v10 }
 0x1d5   : > { %1048 = vrot.lane.b32.xlu1 %v2011_v50, %s1771_s6  ;;  %1046 = vrot.lane.b32.xlu0 %v2024_v52, %s1771_s6 }
 0x1d7   : > { %v785_v11 = vpop.permute.xlu1 %784  ;;  %v783_v12 = vpop.permute.xlu0 %782 }
 0x1d8   : > { %1524 = vst.msk [vmem:[%s2105_s27 + $0xe8] sm:$0xff] %vm532_vm1, %v785_v11  ;;  %1523 = vst.msk [vmem:[%s2105_s27 + $0xe0] sm:$0xff] %vm532_vm1, %v783_v12 }
 0x1d9   : > { %1085 = vrot.lane.b32.xlu1 %v1890_v23, %s1772_s7  ;;  %1083 = vrot.lane.b32.xlu0 %v1902_v27, %s1772_s7 }
 0x1db   : > { %v834_v13 = vpop.permute.xlu1 %833  ;;  %v832_v14 = vpop.permute.xlu0 %831 }
 0x1dc   : > { %1532 = vst.msk [vmem:[%s2119_s30 + $0xa8] sm:$0xff] %vm532_vm1, %v834_v13  ;;  %1531 = vst.msk [vmem:[%s2119_s30 + $0xa0] sm:$0xff] %vm532_vm1, %v832_v14 }
 0x1dd   : > { %1089 = vrot.lane.b32.xlu1 %v1918_v31, %s1772_s7  ;;  %1087 = vrot.lane.b32.xlu0 %v1931_v35, %s1772_s7 }
 0x1df   : > { %v850_v15 = vpop.permute.xlu1 %849  ;;  %v848_v16 = vpop.permute.xlu0 %847 }
 0x1e0   : > { %1540 = vst.msk [vmem:[%s2119_s30 + $0xe8] sm:$0xff] %vm532_vm1, %v850_v15  ;;  %1539 = vst.msk [vmem:[%s2119_s30 + $0xe0] sm:$0xff] %vm532_vm1, %v848_v16 }
 0x1e1   : > { %1093 = vrot.lane.b32.xlu1 %v1946_v39, %s1772_s7  ;;  %1091 = vrot.lane.b32.xlu0 %v1959_v43, %s1772_s7 }
 0x1e3   : > { %v899_v17 = vpop.permute.xlu1 %898  ;;  %v897_v18 = vpop.permute.xlu0 %896 }
 0x1e4   : > { %1548 = vst.msk [vmem:[%s1887_s14 + $0x128] sm:$0xff] %vm532_vm1, %v899_v17  ;;  %1547 = vst.msk [vmem:[%s1887_s14 + $0x120] sm:$0xff] %vm532_vm1, %v897_v18 }
 0x1e5   : > { %1097 = vrot.lane.b32.xlu1 %v1998_v46, %s1772_s7  ;;  %1095 = vrot.lane.b32.xlu0 %v2008_v48, %s1772_s7 }
 0x1e7   : > { %v915_v19 = vpop.permute.xlu1 %914  ;;  %v913_v20 = vpop.permute.xlu0 %912 }
 0x1e8   : > { %1556 = vst.msk [vmem:[%s1887_s14 + $0x168] sm:$0xff] %vm532_vm1, %v915_v19  ;;  %1555 = vst.msk [vmem:[%s1887_s14 + $0x160] sm:$0xff] %vm532_vm1, %v913_v20 }
 0x1e9   : > { %1101 = vrot.lane.b32.xlu1 %v1893_v24, %s1772_s7  ;;  %1099 = vrot.lane.b32.xlu0 %v1905_v28, %s1772_s7 }
 0x1eb   : > { %v964_v21 = vpop.permute.xlu1 %963  ;;  %v962_v22 = vpop.permute.xlu0 %961 }
 0x1ec   : > { %1564 = vst.msk [vmem:[%s2105_s27 + $0x128] sm:$0xff] %vm532_vm1, %v964_v21  ;;  %1563 = vst.msk [vmem:[%s2105_s27 + $0x120] sm:$0xff] %vm532_vm1, %v962_v22 }
 0x1ed   : > { %1105 = vrot.lane.b32.xlu1 %v1921_v32, %s1772_s7  ;;  %1103 = vrot.lane.b32.xlu0 %v1937_v36, %s1772_s7 }
 0x1ef   : > { %v980_v25 = vpop.permute.xlu1 %979  ;;  %v978_v26 = vpop.permute.xlu0 %977 }
 0x1f0   : > { %1572 = vst.msk [vmem:[%s2105_s27 + $0x168] sm:$0xff] %vm532_vm1, %v980_v25  ;;  %1571 = vst.msk [vmem:[%s2105_s27 + $0x160] sm:$0xff] %vm532_vm1, %v978_v26 }
 0x1f1   : > { %1109 = vrot.lane.b32.xlu1 %v1949_v40, %s1772_s7  ;;  %1107 = vrot.lane.b32.xlu0 %v1965_v44, %s1772_s7 }
 0x1f3   : > { %v580_v29 = vpop.permute.xlu1 %579  ;;  %v578_v30 = vpop.permute.xlu0 %577 }
 0x1f4   : > { %620 = vst.msk [vmem:[%s2105_s27 + $0x38] sm:$0xff] %vm532_vm1, %v580_v29  ;;  %619 = vst.msk [vmem:[%s2105_s27 + $0x30] sm:$0xff] %vm532_vm1, %v578_v30 }
 0x1f5   : > { %1113 = vrot.lane.b32.xlu1 %v2011_v50, %s1772_s7  ;;  %1111 = vrot.lane.b32.xlu0 %v2024_v52, %s1772_s7 }
 0x1f7   : > { %v596_v33 = vpop.permute.xlu1 %595  ;;  %v594_v34 = vpop.permute.xlu0 %593 }
 0x1f8   : > { %628 = vst.msk [vmem:[%s2105_s27 + $0x78] sm:$0xff] %vm532_vm1, %v596_v33  ;;  %627 = vst.msk [vmem:[%s2105_s27 + $0x70] sm:$0xff] %vm532_vm1, %v594_v34 }
 0x1f9   : > { %1150 = vrot.lane.b32.xlu1 %v1890_v23, %s1773_s8  ;;  %1148 = vrot.lane.b32.xlu0 %v1902_v27, %s1773_s8 }
 0x1fb   : > { %v644_v37 = vpop.permute.xlu1 %643  ;;  %v642_v38 = vpop.permute.xlu0 %641 }
 0x1fc   : > { %684 = vst.msk [vmem:[%s2119_s30 + $0x38] sm:$0xff] %vm532_vm1, %v644_v37  ;;  %683 = vst.msk [vmem:[%s2119_s30 + $0x30] sm:$0xff] %vm532_vm1, %v642_v38 }
 0x1fd   : > { %1154 = vrot.lane.b32.xlu1 %v1918_v31, %s1773_s8  ;;  %1152 = vrot.lane.b32.xlu0 %v1931_v35, %s1773_s8 }
 0x1ff   : > { %v660_v41 = vpop.permute.xlu1 %659  ;;  %v658_v42 = vpop.permute.xlu0 %657 }
 0x200   : > { %692 = vst.msk [vmem:[%s2119_s30 + $0x78] sm:$0xff] %vm532_vm1, %v660_v41  ;;  %691 = vst.msk [vmem:[%s2119_s30 + $0x70] sm:$0xff] %vm532_vm1, %v658_v42 }
 0x201   : > { %1158 = vrot.lane.b32.xlu1 %v1946_v39, %s1773_s8  ;;  %1156 = vrot.lane.b32.xlu0 %v1959_v43, %s1773_s8 }
 0x203   : > { %v708_v45 = vpop.permute.xlu1 %707  ;;  %v706_v47 = vpop.permute.xlu0 %705 }
 0x204   : > { %1502 = vst.msk [vmem:[%s1887_s14 + $0xb8] sm:$0xff] %vm532_vm1, %v708_v45  ;;  %1501 = vst.msk [vmem:[%s1887_s14 + $0xb0] sm:$0xff] %vm532_vm1, %v706_v47 }
 0x205   : > { %1162 = vrot.lane.b32.xlu1 %v1998_v46, %s1773_s8  ;;  %1160 = vrot.lane.b32.xlu0 %v2008_v48, %s1773_s8 }
 0x207   : > { %v724_v49 = vpop.permute.xlu1 %723  ;;  %v722_v51 = vpop.permute.xlu0 %721 }
 0x208   : > { %1510 = vst.msk [vmem:[%s1887_s14 + $0xf8] sm:$0xff] %vm532_vm1, %v724_v49  ;;  %1509 = vst.msk [vmem:[%s1887_s14 + $0xf0] sm:$0xff] %vm532_vm1, %v722_v51 }
 0x209   : > { %1166 = vrot.lane.b32.xlu1 %v1893_v24, %s1773_s8  ;;  %1164 = vrot.lane.b32.xlu0 %v1905_v28, %s1773_s8 }
 0x20b   : > { %v773_v53 = vpop.permute.xlu1 %772  ;;  %v771_v54 = vpop.permute.xlu0 %770 }
 0x20c   : > { %1518 = vst.msk [vmem:[%s2105_s27 + $0xb8] sm:$0xff] %vm532_vm1, %v773_v53  ;;  %1517 = vst.msk [vmem:[%s2105_s27 + $0xb0] sm:$0xff] %vm532_vm1, %v771_v54 }
 0x20d   : > { %1170 = vrot.lane.b32.xlu1 %v1921_v32, %s1773_s8  ;;  %1168 = vrot.lane.b32.xlu0 %v1937_v36, %s1773_s8 }
 0x20f   : > { %v789_v55 = vpop.permute.xlu1 %788  ;;  %v787_v56 = vpop.permute.xlu0 %786 }
 0x210   : > { %1526 = vst.msk [vmem:[%s2105_s27 + $0xf8] sm:$0xff] %vm532_vm1, %v789_v55  ;;  %1525 = vst.msk [vmem:[%s2105_s27 + $0xf0] sm:$0xff] %vm532_vm1, %v787_v56 }
 0x211   : > { %1174 = vrot.lane.b32.xlu1 %v1949_v40, %s1773_s8  ;;  %1172 = vrot.lane.b32.xlu0 %v1965_v44, %s1773_s8 }
 0x213   : > { %v838_v57 = vpop.permute.xlu1 %837  ;;  %v836_v58 = vpop.permute.xlu0 %835 }
 0x214   : > { %1534 = vst.msk [vmem:[%s2119_s30 + $0xb8] sm:$0xff] %vm532_vm1, %v838_v57  ;;  %1533 = vst.msk [vmem:[%s2119_s30 + $0xb0] sm:$0xff] %vm532_vm1, %v836_v58 }
 0x215   : > { %1178 = vrot.lane.b32.xlu1 %v2011_v50, %s1773_s8  ;;  %1176 = vrot.lane.b32.xlu0 %v2024_v52, %s1773_s8 }
 0x217   : > { %v854_v59 = vpop.permute.xlu1 %853  ;;  %v852_v60 = vpop.permute.xlu0 %851 }
 0x218   : > { %1542 = vst.msk [vmem:[%s2119_s30 + $0xf8] sm:$0xff] %vm532_vm1, %v854_v59  ;;  %1541 = vst.msk [vmem:[%s2119_s30 + $0xf0] sm:$0xff] %vm532_vm1, %v852_v60 }
 0x219   : > { %1215 = vrot.lane.b32.xlu1 %v1890_v23, %s1774_s9  ;;  %1213 = vrot.lane.b32.xlu0 %v1902_v27, %s1774_s9 }
 0x21b   : > { %v903_v61 = vpop.permute.xlu1 %902  ;;  %v901_v62 = vpop.permute.xlu0 %900 }
 0x21c   : > { %1550 = vst.msk [vmem:[%s1887_s14 + $0x138] sm:$0xff] %vm532_vm1, %v903_v61  ;;  %1549 = vst.msk [vmem:[%s1887_s14 + $0x130] sm:$0xff] %vm532_vm1, %v901_v62 }
 0x21d   : > { %1219 = vrot.lane.b32.xlu1 %v1918_v31, %s1774_s9  ;;  %1217 = vrot.lane.b32.xlu0 %v1931_v35, %s1774_s9 }
 0x21f   : > { %v919_v23 = vpop.permute.xlu1 %918  ;;  %v917_v63 = vpop.permute.xlu0 %916 }
 0x220   : > { %1558 = vst.msk [vmem:[%s1887_s14 + $0x178] sm:$0xff] %vm532_vm1, %v919_v23  ;;  %1557 = vst.msk [vmem:[%s1887_s14 + $0x170] sm:$0xff] %vm532_vm1, %v917_v63 }
 0x221   : > { %1223 = vrot.lane.b32.xlu1 %v1946_v39, %s1774_s9  ;;  %1221 = vrot.lane.b32.xlu0 %v1959_v43, %s1774_s9 }
 0x223   : > { %v968_v27 = vpop.permute.xlu1 %967  ;;  %v966_v31 = vpop.permute.xlu0 %965 }
 0x224   : > { %1566 = vst.msk [vmem:[%s2105_s27 + $0x138] sm:$0xff] %vm532_vm1, %v968_v27  ;;  %1565 = vst.msk [vmem:[%s2105_s27 + $0x130] sm:$0xff] %vm532_vm1, %v966_v31 }
 0x225   : > { %1227 = vrot.lane.b32.xlu1 %v1998_v46, %s1774_s9  ;;  %1225 = vrot.lane.b32.xlu0 %v2008_v48, %s1774_s9 }
 0x227   : > { %v984_v35 = vpop.permute.xlu1 %983  ;;  %v982_v39 = vpop.permute.xlu0 %981 }
 0x228   : > { %1574 = vst.msk [vmem:[%s2105_s27 + $0x178] sm:$0xff] %vm532_vm1, %v984_v35  ;;  %1573 = vst.msk [vmem:[%s2105_s27 + $0x170] sm:$0xff] %vm532_vm1, %v982_v39 }
 0x229   : > { %1231 = vrot.lane.b32.xlu1 %v1893_v24, %s1774_s9  ;;  %1229 = vrot.lane.b32.xlu0 %v1905_v28, %s1774_s9 }
 0x22b   : > { %v1021_v43 = vpop.permute.xlu1 %1020  ;;  %v1019_v46 = vpop.permute.xlu0 %1018 }
 0x22c   : > { %1576 = vst.msk [vmem:[%s2119_s30 + $0x108] sm:$0xff] %vm532_vm1, %v1021_v43  ;;  %1575 = vst.msk [vmem:[%s2119_s30 + $0x100] sm:$0xff] %vm532_vm1, %v1019_v46 }
 0x22d   : > { %1235 = vrot.lane.b32.xlu1 %v1921_v32, %s1774_s9  ;;  %1233 = vrot.lane.b32.xlu0 %v1937_v36, %s1774_s9 }
 0x22f   : > { %v1025_v24 = vpop.permute.xlu1 %1024  ;;  %v1023_v48 = vpop.permute.xlu0 %1022 }
 0x230   : > { %1578 = vst.msk [vmem:[%s2119_s30 + $0x118] sm:$0xff] %vm532_vm1, %v1025_v24  ;;  %1577 = vst.msk [vmem:[%s2119_s30 + $0x110] sm:$0xff] %vm532_vm1, %v1023_v48 }
 0x231   : > { %1239 = vrot.lane.b32.xlu1 %v1949_v40, %s1774_s9  ;;  %1237 = vrot.lane.b32.xlu0 %v1965_v44, %s1774_s9 }
 0x233   : > { %v1029_v28 = vpop.permute.xlu1 %1028  ;;  %v1027_v32 = vpop.permute.xlu0 %1026 }
 0x234   : > { %1580 = vst.msk [vmem:[%s2119_s30 + $0x128] sm:$0xff] %vm532_vm1, %v1029_v28  ;;  %1579 = vst.msk [vmem:[%s2119_s30 + $0x120] sm:$0xff] %vm532_vm1, %v1027_v32 }
 0x235   : > { %1243 = vrot.lane.b32.xlu1 %v2011_v50, %s1774_s9  ;;  %1241 = vrot.lane.b32.xlu0 %v2024_v52, %s1774_s9 }
 0x237   : > { %v1033_v36 = vpop.permute.xlu1 %1032  ;;  %v1031_v40 = vpop.permute.xlu0 %1030 }
 0x238   : > { %1582 = vst.msk [vmem:[%s2119_s30 + $0x138] sm:$0xff] %vm532_vm1, %v1033_v36  ;;  %1581 = vst.msk [vmem:[%s2119_s30 + $0x130] sm:$0xff] %vm532_vm1, %v1031_v40 }
 0x23b   : > { %v1037_v44 = vpop.permute.xlu1 %1036  ;;  %v1035_v0 = vpop.permute.xlu0 %1034 }
 0x23c   : > { %1584 = vst.msk [vmem:[%s2119_s30 + $0x148] sm:$0xff] %vm532_vm1, %v1037_v44  ;;  %1583 = vst.msk [vmem:[%s2119_s30 + $0x140] sm:$0xff] %vm532_vm1, %v1035_v0 }
 0x23f   : > { %v1041_v50 = vpop.permute.xlu1 %1040  ;;  %v1039_v1 = vpop.permute.xlu0 %1038 }
 0x240   : > { %1586 = vst.msk [vmem:[%s2119_s30 + $0x158] sm:$0xff] %vm532_vm1, %v1041_v50  ;;  %1585 = vst.msk [vmem:[%s2119_s30 + $0x150] sm:$0xff] %vm532_vm1, %v1039_v1 }
 0x243   : > { %v1045_v52 = vpop.permute.xlu1 %1044  ;;  %v1043_v2 = vpop.permute.xlu0 %1042 }
 0x244   : > { %1588 = vst.msk [vmem:[%s2119_s30 + $0x168] sm:$0xff] %vm532_vm1, %v1045_v52  ;;  %1587 = vst.msk [vmem:[%s2119_s30 + $0x160] sm:$0xff] %vm532_vm1, %v1043_v2 }
 0x247   : > { %v1049_v3 = vpop.permute.xlu1 %1048  ;;  %v1047_v4 = vpop.permute.xlu0 %1046 }
 0x248   : > { %1590 = vst.msk [vmem:[%s2119_s30 + $0x178] sm:$0xff] %vm532_vm1, %v1049_v3  ;;  %1589 = vst.msk [vmem:[%s2119_s30 + $0x170] sm:$0xff] %vm532_vm1, %v1047_v4 }
 0x24b   : > { %v1086_v5 = vpop.permute.xlu1 %1085  ;;  %v1084_v6 = vpop.permute.xlu0 %1083 }
 0x24c   : > { %1592 = vst.msk [vmem:[%s1887_s14 + $0x188] sm:$0xff] %vm532_vm1, %v1086_v5  ;;  %1591 = vst.msk [vmem:[%s1887_s14 + $0x180] sm:$0xff] %vm532_vm1, %v1084_v6 }
 0x24f   : > { %v1090_v7 = vpop.permute.xlu1 %1089  ;;  %v1088_v8 = vpop.permute.xlu0 %1087 }
 0x250   : > { %1594 = vst.msk [vmem:[%s1887_s14 + $0x198] sm:$0xff] %vm532_vm1, %v1090_v7  ;;  %1593 = vst.msk [vmem:[%s1887_s14 + $0x190] sm:$0xff] %vm532_vm1, %v1088_v8 }
 0x253   : > { %v1094_v9 = vpop.permute.xlu1 %1093  ;;  %v1092_v10 = vpop.permute.xlu0 %1091 }
 0x254   : > { %1596 = vst.msk [vmem:[%s1887_s14 + $0x1a8] sm:$0xff] %vm532_vm1, %v1094_v9  ;;  %1595 = vst.msk [vmem:[%s1887_s14 + $0x1a0] sm:$0xff] %vm532_vm1, %v1092_v10 }
 0x257   : > { %v1098_v11 = vpop.permute.xlu1 %1097  ;;  %v1096_v12 = vpop.permute.xlu0 %1095 }
 0x258   : > { %1598 = vst.msk [vmem:[%s1887_s14 + $0x1b8] sm:$0xff] %vm532_vm1, %v1098_v11  ;;  %1597 = vst.msk [vmem:[%s1887_s14 + $0x1b0] sm:$0xff] %vm532_vm1, %v1096_v12 }
 0x25b   : > { %v1102_v13 = vpop.permute.xlu1 %1101  ;;  %v1100_v14 = vpop.permute.xlu0 %1099 }
 0x25c   : > { %1600 = vst.msk [vmem:[%s1887_s14 + $0x1c8] sm:$0xff] %vm532_vm1, %v1102_v13  ;;  %1599 = vst.msk [vmem:[%s1887_s14 + $0x1c0] sm:$0xff] %vm532_vm1, %v1100_v14 }
 0x25f   : > { %v1106_v15 = vpop.permute.xlu1 %1105  ;;  %v1104_v16 = vpop.permute.xlu0 %1103 }
 0x260   : > { %1602 = vst.msk [vmem:[%s1887_s14 + $0x1d8] sm:$0xff] %vm532_vm1, %v1106_v15  ;;  %1601 = vst.msk [vmem:[%s1887_s14 + $0x1d0] sm:$0xff] %vm532_vm1, %v1104_v16 }
 0x263   : > { %v1110_v17 = vpop.permute.xlu1 %1109  ;;  %v1108_v18 = vpop.permute.xlu0 %1107 }
 0x264   : > { %1604 = vst.msk [vmem:[%s1887_s14 + $0x1e8] sm:$0xff] %vm532_vm1, %v1110_v17  ;;  %1603 = vst.msk [vmem:[%s1887_s14 + $0x1e0] sm:$0xff] %vm532_vm1, %v1108_v18 }
 0x267   : > { %v1114_v19 = vpop.permute.xlu1 %1113  ;;  %v1112_v20 = vpop.permute.xlu0 %1111 }
 0x268   : > { %1606 = vst.msk [vmem:[%s1887_s14 + $0x1f8] sm:$0xff] %vm532_vm1, %v1114_v19  ;;  %1605 = vst.msk [vmem:[%s1887_s14 + $0x1f0] sm:$0xff] %vm532_vm1, %v1112_v20 }
 0x26b   : > { %v1151_v21 = vpop.permute.xlu1 %1150  ;;  %v1149_v22 = vpop.permute.xlu0 %1148 }
 0x26c   : > { %1608 = vst.msk [vmem:[%s2105_s27 + $0x188] sm:$0xff] %vm532_vm1, %v1151_v21  ;;  %1607 = vst.msk [vmem:[%s2105_s27 + $0x180] sm:$0xff] %vm532_vm1, %v1149_v22 }
 0x26f   : > { %v1155_v25 = vpop.permute.xlu1 %1154  ;;  %v1153_v26 = vpop.permute.xlu0 %1152 }
 0x270   : > { %1610 = vst.msk [vmem:[%s2105_s27 + $0x198] sm:$0xff] %vm532_vm1, %v1155_v25  ;;  %1609 = vst.msk [vmem:[%s2105_s27 + $0x190] sm:$0xff] %vm532_vm1, %v1153_v26 }
 0x273   : > { %v1159_v29 = vpop.permute.xlu1 %1158  ;;  %v1157_v30 = vpop.permute.xlu0 %1156 }
 0x274   : > { %1612 = vst.msk [vmem:[%s2105_s27 + $0x1a8] sm:$0xff] %vm532_vm1, %v1159_v29  ;;  %1611 = vst.msk [vmem:[%s2105_s27 + $0x1a0] sm:$0xff] %vm532_vm1, %v1157_v30 }
 0x277   : > { %v1163_v33 = vpop.permute.xlu1 %1162  ;;  %v1161_v34 = vpop.permute.xlu0 %1160 }
 0x278   : > { %1614 = vst.msk [vmem:[%s2105_s27 + $0x1b8] sm:$0xff] %vm532_vm1, %v1163_v33  ;;  %1613 = vst.msk [vmem:[%s2105_s27 + $0x1b0] sm:$0xff] %vm532_vm1, %v1161_v34 }
 0x27b   : > { %v1167_v37 = vpop.permute.xlu1 %1166  ;;  %v1165_v38 = vpop.permute.xlu0 %1164 }
 0x27c   : > { %1616 = vst.msk [vmem:[%s2105_s27 + $0x1c8] sm:$0xff] %vm532_vm1, %v1167_v37  ;;  %1615 = vst.msk [vmem:[%s2105_s27 + $0x1c0] sm:$0xff] %vm532_vm1, %v1165_v38 }
 0x27f   : > { %v1171_v41 = vpop.permute.xlu1 %1170  ;;  %v1169_v42 = vpop.permute.xlu0 %1168 }
 0x280   : > { %1618 = vst.msk [vmem:[%s2105_s27 + $0x1d8] sm:$0xff] %vm532_vm1, %v1171_v41  ;;  %1617 = vst.msk [vmem:[%s2105_s27 + $0x1d0] sm:$0xff] %vm532_vm1, %v1169_v42 }
 0x283   : > { %v1175_v45 = vpop.permute.xlu1 %1174  ;;  %v1173_v47 = vpop.permute.xlu0 %1172 }
 0x284   : > { %1620 = vst.msk [vmem:[%s2105_s27 + $0x1e8] sm:$0xff] %vm532_vm1, %v1175_v45  ;;  %1619 = vst.msk [vmem:[%s2105_s27 + $0x1e0] sm:$0xff] %vm532_vm1, %v1173_v47 }
 0x287   : > { %v1179_v49 = vpop.permute.xlu1 %1178  ;;  %v1177_v51 = vpop.permute.xlu0 %1176 }
 0x288   : > { %1622 = vst.msk [vmem:[%s2105_s27 + $0x1f8] sm:$0xff] %vm532_vm1, %v1179_v49  ;;  %1621 = vst.msk [vmem:[%s2105_s27 + $0x1f0] sm:$0xff] %vm532_vm1, %v1177_v51 }
 0x28b   : > { %v1216_v53 = vpop.permute.xlu1 %1215  ;;  %v1214_v54 = vpop.permute.xlu0 %1213 }
 0x28c   : > { %1624 = vst.msk [vmem:[%s2119_s30 + $0x188] sm:$0xff] %vm532_vm1, %v1216_v53  ;;  %1623 = vst.msk [vmem:[%s2119_s30 + $0x180] sm:$0xff] %vm532_vm1, %v1214_v54 }
 0x28f   : > { %v1220_v55 = vpop.permute.xlu1 %1219  ;;  %v1218_v56 = vpop.permute.xlu0 %1217 }
 0x290   : > { %1626 = vst.msk [vmem:[%s2119_s30 + $0x198] sm:$0xff] %vm532_vm1, %v1220_v55  ;;  %1625 = vst.msk [vmem:[%s2119_s30 + $0x190] sm:$0xff] %vm532_vm1, %v1218_v56 }
 0x293   : > { %v1224_v57 = vpop.permute.xlu1 %1223  ;;  %v1222_v58 = vpop.permute.xlu0 %1221 }
 0x294   : > { %1628 = vst.msk [vmem:[%s2119_s30 + $0x1a8] sm:$0xff] %vm532_vm1, %v1224_v57  ;;  %1627 = vst.msk [vmem:[%s2119_s30 + $0x1a0] sm:$0xff] %vm532_vm1, %v1222_v58 }
 0x297   : > { %v1228_v59 = vpop.permute.xlu1 %1227  ;;  %v1226_v60 = vpop.permute.xlu0 %1225 }
 0x298   : > { %1630 = vst.msk [vmem:[%s2119_s30 + $0x1b8] sm:$0xff] %vm532_vm1, %v1228_v59  ;;  %1629 = vst.msk [vmem:[%s2119_s30 + $0x1b0] sm:$0xff] %vm532_vm1, %v1226_v60 }
 0x29b   : > { %v1232_v61 = vpop.permute.xlu1 %1231  ;;  %v1230_v62 = vpop.permute.xlu0 %1229 }
 0x29c   : > { %1632 = vst.msk [vmem:[%s2119_s30 + $0x1c8] sm:$0xff] %vm532_vm1, %v1232_v61  ;;  %1631 = vst.msk [vmem:[%s2119_s30 + $0x1c0] sm:$0xff] %vm532_vm1, %v1230_v62 }
 0x29f   : > { %v1236_v23 = vpop.permute.xlu1 %1235  ;;  %v1234_v63 = vpop.permute.xlu0 %1233 }
 0x2a0   : > { %1634 = vst.msk [vmem:[%s2119_s30 + $0x1d8] sm:$0xff] %vm532_vm1, %v1236_v23  ;;  %1633 = vst.msk [vmem:[%s2119_s30 + $0x1d0] sm:$0xff] %vm532_vm1, %v1234_v63 }
 0x2a3   : > { %v1240_v27 = vpop.permute.xlu1 %1239  ;;  %v1238_v31 = vpop.permute.xlu0 %1237 }
 0x2a4   : > { %1636 = vst.msk [vmem:[%s2119_s30 + $0x1e8] sm:$0xff] %vm532_vm1, %v1240_v27  ;;  %1635 = vst.msk [vmem:[%s2119_s30 + $0x1e0] sm:$0xff] %vm532_vm1, %v1238_v31 }
 0x2a7   : > { %v1244_v35 = vpop.permute.xlu1 %1243  ;;  %v1242_v39 = vpop.permute.xlu0 %1241 }
 0x2a8   : > { %1638 = vst.msk [vmem:[%s2119_s30 + $0x1f8] sm:$0xff] %vm532_vm1, %v1244_v35  ;;  %1637 = vst.msk [vmem:[%s2119_s30 + $0x1f0] sm:$0xff] %vm532_vm1, %v1242_v39 }
 0x2a9 PF: > { %s16_s20 = sadd.s32 1, %s1762_s20   ;;  %s2716_s18 = smov %s1758_s19 }
 0x2aa   : > { %p13_p5 = scmp.ge.s32.totalorder %s16_s20, 4   ;;  %s2717_s19 = smov %s2719_s21 }
 0x2ac   :  { %15 = sbr.rel (!%p13_p5) target bundleno = 2 (0x2), region = 95 }

</bundles_post_ra>
